<compile_context>
chip_gen: v7x
topology: tpu7x:2x2x1
jax: 0.10.0
libtpu: 0.0.40
codegen_flags: <defaults>
</compile_context>

<pallas_src>
import functools

import jax
import jax.numpy as jnp
import numpy as np
from jax.experimental import pallas as pl
from jax.experimental.pallas import tpu as pltpu

_EPS = 1e-5


# ----------------------------- Pallas kernel -------------------------------
def _mg_ite_kernel(u_ref, f_ref, wA_ref, wS_ref, p_ref, m_ref, out_ref, pad_ref,
                   *, W):
    """Fused MgIte forward.

    Shapes (all float32):
      u_ref, f_ref, out_ref : (N, C, HW)            NCHW activations, HW flattened
      wA_ref, wS_ref        : (9, C, C)             3x3 weights, tap-major (kh, kw)
      p_ref                 : (1, C, 6)             [bA, bS, g1, b1, g2, b2]
      m_ref                 : (9, 1, 1, HW)         0/1 boundary masks per tap
      pad_ref (scratch)     : (N, C, HW + 2*(W+1))  flat zero-padded activation
    """
    N, C, HW = u_ref.shape
    B = W + 1                                  # flat pad width on each side
    inv_cnt = 1.0 / float(N * HW)

    u = u_ref[...]
    f = f_ref[...]
    wA = wA_ref[...]
    wS = wS_ref[...]
    p = p_ref[...]
    masks = m_ref[...]

    bA, bS = p[:, :, 0:1], p[:, :, 1:2]
    g1, b1 = p[:, :, 2:3], p[:, :, 3:4]
    g2, b2 = p[:, :, 4:5], p[:, :, 5:6]

    # Zero the flat-pad borders once; the interior is overwritten per stage.
    pad_ref[...] = jnp.zeros(pad_ref.shape, jnp.float32)

    def conv3x3(x, w9, bias):
        """3x3 'same' conv (cross-correlation) of x:(N,C,HW) with w9:(9,C,C)."""
        # Write x into the middle of the zero-padded scratch so every tap is a
        # plain static lane-slice: tap_s[p] = x[p + s] (zero outside the image).
        pad_ref[:, :, B:B + HW] = x
        taps = []
        for kh in range(3):
            for kw in range(3):
                s = (kh - 1) * W + (kw - 1)                 # flat tap offset
                taps.append(pad_ref[:, :, B + s:B + s + HW]
                            * masks[kh * 3 + kw])           # mask row/col wraps
        outs = []
        for n in range(N):                                   # tiny static batch
            acc = jnp.dot(w9[0], taps[0][n],
                          preferred_element_type=jnp.float32)
            for j in range(1, 9):
                acc = acc + jnp.dot(w9[j], taps[j][n],
                                    preferred_element_type=jnp.float32)
            outs.append(acc)
        return jnp.stack(outs, axis=0) + bias                # (N, C, HW)

    def bn(z, g, b):
        """Training-mode BatchNorm2d: biased batch variance, single pass."""
        s1 = jnp.sum(jnp.sum(z, axis=2, keepdims=True), axis=0, keepdims=True)
        s2 = jnp.sum(jnp.sum(z * z, axis=2, keepdims=True), axis=0, keepdims=True)
        mean = s1 * inv_cnt
        var = jnp.maximum(s2 * inv_cnt - mean * mean, 0.0)
        return (z - mean) * (jax.lax.rsqrt(var + _EPS) * g) + b

    # stage 1: t = relu(bn1(f - A(u)))       (t stays in VMEM / vregs)
    t = jnp.maximum(bn(f - conv3x3(u, wA, bA), g1, b1), 0.0)
    # stage 2: u_new = u + relu(bn2(S(t)))
    out_ref[...] = u + jnp.maximum(bn(conv3x3(t, wS, bS), g2, b2), 0.0)


# ------------------------------- JAX glue ----------------------------------
def _conv_w9(w_oihw):
    """torch Conv2d weight (Cout, Cin, 3, 3) -> (9, Cout, Cin), tap-major."""
    cout, cin, kh, kw = w_oihw.shape
    return jnp.transpose(w_oihw, (2, 3, 0, 1)).reshape(kh * kw, cout, cin)


def _tap_masks(H, W):
    """(9,1,1,H*W) 0/1 masks: 1 iff (h+kh-1, w+kw-1) lies inside the image."""
    pos = np.arange(H * W)
    h, w = pos // W, pos % W
    m = []
    for kh in range(3):
        for kw in range(3):
            dh, dw = kh - 1, kw - 1
            m.append((h + dh >= 0) & (h + dh < H) & (w + dw >= 0) & (w + dw < W))
    return jnp.asarray(np.stack(m).astype(np.float32).reshape(9, 1, 1, H * W))


def mg_ite_forward(u, f, params):
    """u, f: (N, C, H, W) float32 (NCHW, same as PyTorch).  Returns (u_new, f)."""
    N, C, H, W = u.shape
    HW = H * W
    pvec = jnp.stack([params["bA"], params["bS"], params["g1"],
                      params["b1"], params["g2"], params["b2"]],
                     axis=-1).reshape(1, C, 6)
    vmem = pl.BlockSpec(memory_space=pltpu.MemorySpace.VMEM)
    # TODO(synk): for large N*H*W, tile HW with a grid, accumulate per-tile BN
    # partial sums (sum, sumsq) plus a second normalization pass, and mark the
    # tile axis "parallel" for megacore; at this size the whole working set
    # (<64 KiB) fits VMEM so one fused block is fastest on v5e/v6e/v7x.
    out = pl.pallas_call(
        functools.partial(_mg_ite_kernel, W=W),
        out_shape=jax.ShapeDtypeStruct((N, C, HW), jnp.float32),
        in_specs=[vmem] * 6,
        out_specs=vmem,
        scratch_shapes=[pltpu.VMEM((N, C, HW + 2 * (W + 1)), jnp.float32)],
    )(u.reshape(N, C, HW), f.reshape(N, C, HW),
      _conv_w9(params["wA"]), _conv_w9(params["wS"]), pvec, _tap_masks(H, W))
    return out.reshape(N, C, H, W), f


# ------------------------- pure-JAX reference ------------------------------
def mg_ite_reference(u, f, params):
    def conv(x, w, b):
        y = jax.lax.conv_general_dilated(
            x, w, window_strides=(1, 1), padding="SAME",
            dimension_numbers=("NCHW", "OIHW", "NCHW"))
        return y + b.reshape(1, -1, 1, 1)

    def bn(x, g, bt):
        mean = x.mean(axis=(0, 2, 3), keepdims=True)
        var = ((x - mean) ** 2).mean(axis=(0, 2, 3), keepdims=True)
        return (x - mean) * jax.lax.rsqrt(var + _EPS) * g.reshape(1, -1, 1, 1) \
            + bt.reshape(1, -1, 1, 1)

    t = jax.nn.relu(bn(f - conv(u, params["wA"], params["bA"]),
                       params["g1"], params["b1"]))
    u_new = u + jax.nn.relu(bn(conv(t, params["wS"], params["bS"]),
                               params["g2"], params["b2"]))
    return u_new, f


# --------------------------------- main -------------------------------------
if __name__ == "__main__":
    N, C, H, W = 2, 4, 16, 16          # PyTorch NCHW (2, 4, 16, 16)

    key = jax.random.PRNGKey(0)
    ku, kf, kwa, kba, kws, kbs = jax.random.split(key, 6)

    u = jax.random.normal(ku, (N, C, H, W), dtype=jnp.float32)
    f = jax.random.normal(kf, (N, C, H, W), dtype=jnp.float32)

    params = {
        # conv weights in torch (Cout, Cin, kh, kw) convention
        "wA": 0.1 * jax.random.normal(kwa, (C, C, 3, 3), dtype=jnp.float32),
        "bA": 0.1 * jax.random.normal(kba, (C,), dtype=jnp.float32),
        "wS": 0.1 * jax.random.normal(kws, (C, C, 3, 3), dtype=jnp.float32),
        "bS": 0.1 * jax.random.normal(kbs, (C,), dtype=jnp.float32),
        # BatchNorm2d default affine init (training mode): weight=1, bias=0
        "g1": jnp.ones((C,), jnp.float32), "b1": jnp.zeros((C,), jnp.float32),
        "g2": jnp.ones((C,), jnp.float32), "b2": jnp.zeros((C,), jnp.float32),
    }

    u_out, f_out = mg_ite_forward(u, f, params)
    u_out = jax.block_until_ready(u_out)

    u_ref, _ = mg_ite_reference(u, f, params)
    assert u_out.shape == (N, C, H, W)
    err = float(jnp.max(jnp.abs(u_out - u_ref)))
    assert jnp.allclose(u_out, u_ref, atol=1e-4, rtol=1e-4), err
    assert jnp.array_equal(f_out, f)

    print("KERNEL_OK")
</pallas_src>

<mosaic_0001>
module attributes {stable_mosaic.version = 11 : i64} {
  func.func @_mg_ite_kernel(%arg0: memref<2x4x256xf32, #tpu.memory_space<vmem>>, %arg1: memref<2x4x256xf32, #tpu.memory_space<vmem>>, %arg2: memref<9x4x4xf32, #tpu.memory_space<vmem>>, %arg3: memref<9x4x4xf32, #tpu.memory_space<vmem>>, %arg4: memref<1x4x6xf32, #tpu.memory_space<vmem>>, %arg5: memref<9x1x1x256xf32, #tpu.memory_space<vmem>>, %arg6: memref<2x4x256xf32, #tpu.memory_space<vmem>>, %arg7: memref<2x4x290xf32, #tpu.memory_space<vmem>>) attributes {dimension_semantics = [], scalar_prefetch = 0 : i64, scratch_operands = 1 : i64, tpu.core_type = #tpu.core_type<tc>} {
    %c0 = arith.constant 0 : index
    %c0_0 = arith.constant 0 : index
    %c0_1 = arith.constant 0 : index
    %0 = vector.load %arg0[%c0, %c0_0, %c0_1] : memref<2x4x256xf32, #tpu.memory_space<vmem>>, vector<2x4x256xf32>
    %c0_2 = arith.constant 0 : index
    %c0_3 = arith.constant 0 : index
    %c0_4 = arith.constant 0 : index
    %1 = vector.load %arg1[%c0_2, %c0_3, %c0_4] : memref<2x4x256xf32, #tpu.memory_space<vmem>>, vector<2x4x256xf32>
    %c0_5 = arith.constant 0 : index
    %c0_6 = arith.constant 0 : index
    %c0_7 = arith.constant 0 : index
    %2 = vector.load %arg2[%c0_5, %c0_6, %c0_7] : memref<9x4x4xf32, #tpu.memory_space<vmem>>, vector<9x4x4xf32>
    %c0_8 = arith.constant 0 : index
    %c0_9 = arith.constant 0 : index
    %c0_10 = arith.constant 0 : index
    %3 = vector.load %arg3[%c0_8, %c0_9, %c0_10] : memref<9x4x4xf32, #tpu.memory_space<vmem>>, vector<9x4x4xf32>
    %c0_11 = arith.constant 0 : index
    %c0_12 = arith.constant 0 : index
    %c0_13 = arith.constant 0 : index
    %4 = vector.load %arg4[%c0_11, %c0_12, %c0_13] : memref<1x4x6xf32, #tpu.memory_space<vmem>>, vector<1x4x6xf32>
    %c0_14 = arith.constant 0 : index
    %c0_15 = arith.constant 0 : index
    %c0_16 = arith.constant 0 : index
    %c0_17 = arith.constant 0 : index
    %5 = vector.load %arg5[%c0_14, %c0_15, %c0_16, %c0_17] : memref<9x1x1x256xf32, #tpu.memory_space<vmem>>, vector<9x1x1x256xf32>
    %6 = vector.extract_strided_slice %4 {offsets = [0, 0, 0], sizes = [1, 4, 1], strides = [1, 1, 1]} : vector<1x4x6xf32> to vector<1x4x1xf32>
    %7 = vector.extract_strided_slice %4 {offsets = [0, 0, 1], sizes = [1, 4, 1], strides = [1, 1, 1]} : vector<1x4x6xf32> to vector<1x4x1xf32>
    %8 = vector.extract_strided_slice %4 {offsets = [0, 0, 2], sizes = [1, 4, 1], strides = [1, 1, 1]} : vector<1x4x6xf32> to vector<1x4x1xf32>
    %9 = vector.extract_strided_slice %4 {offsets = [0, 0, 3], sizes = [1, 4, 1], strides = [1, 1, 1]} : vector<1x4x6xf32> to vector<1x4x1xf32>
    %10 = vector.extract_strided_slice %4 {offsets = [0, 0, 4], sizes = [1, 4, 1], strides = [1, 1, 1]} : vector<1x4x6xf32> to vector<1x4x1xf32>
    %11 = vector.extract_strided_slice %4 {offsets = [0, 0, 5], sizes = [1, 4, 1], strides = [1, 1, 1]} : vector<1x4x6xf32> to vector<1x4x1xf32>
    %cst = arith.constant 0.000000e+00 : f32
    %12 = vector.broadcast %cst : f32 to vector<2x4x290xf32>
    %c0_18 = arith.constant 0 : index
    %c0_19 = arith.constant 0 : index
    %c0_20 = arith.constant 0 : index
    %13 = vector.load %arg7[%c0_18, %c0_19, %c0_20] : memref<2x4x290xf32, #tpu.memory_space<vmem>>, vector<2x4x290xf32>
    tpu.vector_store %arg7[%c0_18, %c0_19, %c0_20], %12 {strides = array<i32>} : memref<2x4x290xf32, #tpu.memory_space<vmem>>, vector<2x4x290xf32>,
    %c0_21 = arith.constant 0 : index
    %c0_22 = arith.constant 0 : index
    %c17 = arith.constant 17 : index
    %14 = vector.load %arg7[%c0_21, %c0_22, %c17] : memref<2x4x290xf32, #tpu.memory_space<vmem>>, vector<2x4x256xf32>
    tpu.vector_store %arg7[%c0_21, %c0_22, %c17], %0 {strides = array<i32>} : memref<2x4x290xf32, #tpu.memory_space<vmem>>, vector<2x4x256xf32>,
    %c0_23 = arith.constant 0 : index
    %c0_24 = arith.constant 0 : index
    %c0_25 = arith.constant 0 : index
    %15 = vector.load %arg7[%c0_23, %c0_24, %c0_25] : memref<2x4x290xf32, #tpu.memory_space<vmem>>, vector<2x4x256xf32>
    %16 = vector.extract_strided_slice %5 {offsets = [0, 0, 0, 0], sizes = [1, 1, 1, 256], strides = [1, 1, 1, 1]} : vector<9x1x1x256xf32> to vector<1x1x1x256xf32>
    %17 = vector.shape_cast %16 : vector<1x1x1x256xf32> to vector<1x1x256xf32>
    %18 = vector.broadcast %17 : vector<1x1x256xf32> to vector<2x4x256xf32>
    %19 = arith.mulf %15, %18 : vector<2x4x256xf32>
    %c0_26 = arith.constant 0 : index
    %c0_27 = arith.constant 0 : index
    %c1 = arith.constant 1 : index
    %20 = vector.load %arg7[%c0_26, %c0_27, %c1] : memref<2x4x290xf32, #tpu.memory_space<vmem>>, vector<2x4x256xf32>
    %21 = vector.extract_strided_slice %5 {offsets = [1, 0, 0, 0], sizes = [1, 1, 1, 256], strides = [1, 1, 1, 1]} : vector<9x1x1x256xf32> to vector<1x1x1x256xf32>
    %22 = vector.shape_cast %21 : vector<1x1x1x256xf32> to vector<1x1x256xf32>
    %23 = vector.broadcast %22 : vector<1x1x256xf32> to vector<2x4x256xf32>
    %24 = arith.mulf %20, %23 : vector<2x4x256xf32>
    %c0_28 = arith.constant 0 : index
    %c0_29 = arith.constant 0 : index
    %c2 = arith.constant 2 : index
    %25 = vector.load %arg7[%c0_28, %c0_29, %c2] : memref<2x4x290xf32, #tpu.memory_space<vmem>>, vector<2x4x256xf32>
    %26 = vector.extract_strided_slice %5 {offsets = [2, 0, 0, 0], sizes = [1, 1, 1, 256], strides = [1, 1, 1, 1]} : vector<9x1x1x256xf32> to vector<1x1x1x256xf32>
    %27 = vector.shape_cast %26 : vector<1x1x1x256xf32> to vector<1x1x256xf32>
    %28 = vector.broadcast %27 : vector<1x1x256xf32> to vector<2x4x256xf32>
    %29 = arith.mulf %25, %28 : vector<2x4x256xf32>
    %c0_30 = arith.constant 0 : index
    %c0_31 = arith.constant 0 : index
    %c16 = arith.constant 16 : index
    %30 = vector.load %arg7[%c0_30, %c0_31, %c16] : memref<2x4x290xf32, #tpu.memory_space<vmem>>, vector<2x4x256xf32>
    %31 = vector.extract_strided_slice %5 {offsets = [3, 0, 0, 0], sizes = [1, 1, 1, 256], strides = [1, 1, 1, 1]} : vector<9x1x1x256xf32> to vector<1x1x1x256xf32>
    %32 = vector.shape_cast %31 : vector<1x1x1x256xf32> to vector<1x1x256xf32>
    %33 = vector.broadcast %32 : vector<1x1x256xf32> to vector<2x4x256xf32>
    %34 = arith.mulf %30, %33 : vector<2x4x256xf32>
    %c0_32 = arith.constant 0 : index
    %c0_33 = arith.constant 0 : index
    %c17_34 = arith.constant 17 : index
    %35 = vector.load %arg7[%c0_32, %c0_33, %c17_34] : memref<2x4x290xf32, #tpu.memory_space<vmem>>, vector<2x4x256xf32>
    %36 = vector.extract_strided_slice %5 {offsets = [4, 0, 0, 0], sizes = [1, 1, 1, 256], strides = [1, 1, 1, 1]} : vector<9x1x1x256xf32> to vector<1x1x1x256xf32>
    %37 = vector.shape_cast %36 : vector<1x1x1x256xf32> to vector<1x1x256xf32>
    %38 = vector.broadcast %37 : vector<1x1x256xf32> to vector<2x4x256xf32>
    %39 = arith.mulf %35, %38 : vector<2x4x256xf32>
    %c0_35 = arith.constant 0 : index
    %c0_36 = arith.constant 0 : index
    %c18 = arith.constant 18 : index
    %40 = vector.load %arg7[%c0_35, %c0_36, %c18] : memref<2x4x290xf32, #tpu.memory_space<vmem>>, vector<2x4x256xf32>
    %41 = vector.extract_strided_slice %5 {offsets = [5, 0, 0, 0], sizes = [1, 1, 1, 256], strides = [1, 1, 1, 1]} : vector<9x1x1x256xf32> to vector<1x1x1x256xf32>
    %42 = vector.shape_cast %41 : vector<1x1x1x256xf32> to vector<1x1x256xf32>
    %43 = vector.broadcast %42 : vector<1x1x256xf32> to vector<2x4x256xf32>
    %44 = arith.mulf %40, %43 : vector<2x4x256xf32>
    %c0_37 = arith.constant 0 : index
    %c0_38 = arith.constant 0 : index
    %c32 = arith.constant 32 : index
    %45 = vector.load %arg7[%c0_37, %c0_38, %c32] : memref<2x4x290xf32, #tpu.memory_space<vmem>>, vector<2x4x256xf32>
    %46 = vector.extract_strided_slice %5 {offsets = [6, 0, 0, 0], sizes = [1, 1, 1, 256], strides = [1, 1, 1, 1]} : vector<9x1x1x256xf32> to vector<1x1x1x256xf32>
    %47 = vector.shape_cast %46 : vector<1x1x1x256xf32> to vector<1x1x256xf32>
    %48 = vector.broadcast %47 : vector<1x1x256xf32> to vector<2x4x256xf32>
    %49 = arith.mulf %45, %48 : vector<2x4x256xf32>
    %c0_39 = arith.constant 0 : index
    %c0_40 = arith.constant 0 : index
    %c33 = arith.constant 33 : index
    %50 = vector.load %arg7[%c0_39, %c0_40, %c33] : memref<2x4x290xf32, #tpu.memory_space<vmem>>, vector<2x4x256xf32>
    %51 = vector.extract_strided_slice %5 {offsets = [7, 0, 0, 0], sizes = [1, 1, 1, 256], strides = [1, 1, 1, 1]} : vector<9x1x1x256xf32> to vector<1x1x1x256xf32>
    %52 = vector.shape_cast %51 : vector<1x1x1x256xf32> to vector<1x1x256xf32>
    %53 = vector.broadcast %52 : vector<1x1x256xf32> to vector<2x4x256xf32>
    %54 = arith.mulf %50, %53 : vector<2x4x256xf32>
    %c0_41 = arith.constant 0 : index
    %c0_42 = arith.constant 0 : index
    %c34 = arith.constant 34 : index
    %55 = vector.load %arg7[%c0_41, %c0_42, %c34] : memref<2x4x290xf32, #tpu.memory_space<vmem>>, vector<2x4x256xf32>
    %56 = vector.extract_strided_slice %5 {offsets = [8, 0, 0, 0], sizes = [1, 1, 1, 256], strides = [1, 1, 1, 1]} : vector<9x1x1x256xf32> to vector<1x1x1x256xf32>
    %57 = vector.shape_cast %56 : vector<1x1x1x256xf32> to vector<1x1x256xf32>
    %58 = vector.broadcast %57 : vector<1x1x256xf32> to vector<2x4x256xf32>
    %59 = arith.mulf %55, %58 : vector<2x4x256xf32>
    %60 = vector.extract_strided_slice %2 {offsets = [0, 0, 0], sizes = [1, 4, 4], strides = [1, 1, 1]} : vector<9x4x4xf32> to vector<1x4x4xf32>
    %61 = vector.shape_cast %60 : vector<1x4x4xf32> to vector<4x4xf32>
    %62 = vector.extract_strided_slice %19 {offsets = [0, 0, 0], sizes = [1, 4, 256], strides = [1, 1, 1]} : vector<2x4x256xf32> to vector<1x4x256xf32>
    %63 = vector.shape_cast %62 : vector<1x4x256xf32> to vector<4x256xf32>
    %cst_43 = arith.constant dense<0.000000e+00> : vector<4x256xf32>
    %64 = tpu.matmul %61, %63, %cst_43 {dimension_numbers = #tpu.dot_dimension_numbers<[1], [0], [0], [1], [0, 0, 1, 1], [], []>} : vector<4x4xf32>, vector<4x256xf32>, vector<4x256xf32> -> vector<4x256xf32>
    %65 = vector.extract_strided_slice %2 {offsets = [1, 0, 0], sizes = [1, 4, 4], strides = [1, 1, 1]} : vector<9x4x4xf32> to vector<1x4x4xf32>
    %66 = vector.shape_cast %65 : vector<1x4x4xf32> to vector<4x4xf32>
    %67 = vector.extract_strided_slice %24 {offsets = [0, 0, 0], sizes = [1, 4, 256], strides = [1, 1, 1]} : vector<2x4x256xf32> to vector<1x4x256xf32>
    %68 = vector.shape_cast %67 : vector<1x4x256xf32> to vector<4x256xf32>
    %cst_44 = arith.constant dense<0.000000e+00> : vector<4x256xf32>
    %69 = tpu.matmul %66, %68, %cst_44 {dimension_numbers = #tpu.dot_dimension_numbers<[1], [0], [0], [1], [0, 0, 1, 1], [], []>} : vector<4x4xf32>, vector<4x256xf32>, vector<4x256xf32> -> vector<4x256xf32>
    %70 = arith.addf %64, %69 : vector<4x256xf32>
    %71 = vector.extract_strided_slice %2 {offsets = [2, 0, 0], sizes = [1, 4, 4], strides = [1, 1, 1]} : vector<9x4x4xf32> to vector<1x4x4xf32>
    %72 = vector.shape_cast %71 : vector<1x4x4xf32> to vector<4x4xf32>
    %73 = vector.extract_strided_slice %29 {offsets = [0, 0, 0], sizes = [1, 4, 256], strides = [1, 1, 1]} : vector<2x4x256xf32> to vector<1x4x256xf32>
    %74 = vector.shape_cast %73 : vector<1x4x256xf32> to vector<4x256xf32>
    %cst_45 = arith.constant dense<0.000000e+00> : vector<4x256xf32>
    %75 = tpu.matmul %72, %74, %cst_45 {dimension_numbers = #tpu.dot_dimension_numbers<[1], [0], [0], [1], [0, 0, 1, 1], [], []>} : vector<4x4xf32>, vector<4x256xf32>, vector<4x256xf32> -> vector<4x256xf32>
    %76 = arith.addf %70, %75 : vector<4x256xf32>
    %77 = vector.extract_strided_slice %2 {offsets = [3, 0, 0], sizes = [1, 4, 4], strides = [1, 1, 1]} : vector<9x4x4xf32> to vector<1x4x4xf32>
    %78 = vector.shape_cast %77 : vector<1x4x4xf32> to vector<4x4xf32>
    %79 = vector.extract_strided_slice %34 {offsets = [0, 0, 0], sizes = [1, 4, 256], strides = [1, 1, 1]} : vector<2x4x256xf32> to vector<1x4x256xf32>
    %80 = vector.shape_cast %79 : vector<1x4x256xf32> to vector<4x256xf32>
    %cst_46 = arith.constant dense<0.000000e+00> : vector<4x256xf32>
    %81 = tpu.matmul %78, %80, %cst_46 {dimension_numbers = #tpu.dot_dimension_numbers<[1], [0], [0], [1], [0, 0, 1, 1], [], []>} : vector<4x4xf32>, vector<4x256xf32>, vector<4x256xf32> -> vector<4x256xf32>
    %82 = arith.addf %76, %81 : vector<4x256xf32>
    %83 = vector.extract_strided_slice %2 {offsets = [4, 0, 0], sizes = [1, 4, 4], strides = [1, 1, 1]} : vector<9x4x4xf32> to vector<1x4x4xf32>
    %84 = vector.shape_cast %83 : vector<1x4x4xf32> to vector<4x4xf32>
    %85 = vector.extract_strided_slice %39 {offsets = [0, 0, 0], sizes = [1, 4, 256], strides = [1, 1, 1]} : vector<2x4x256xf32> to vector<1x4x256xf32>
    %86 = vector.shape_cast %85 : vector<1x4x256xf32> to vector<4x256xf32>
    %cst_47 = arith.constant dense<0.000000e+00> : vector<4x256xf32>
    %87 = tpu.matmul %84, %86, %cst_47 {dimension_numbers = #tpu.dot_dimension_numbers<[1], [0], [0], [1], [0, 0, 1, 1], [], []>} : vector<4x4xf32>, vector<4x256xf32>, vector<4x256xf32> -> vector<4x256xf32>
    %88 = arith.addf %82, %87 : vector<4x256xf32>
    %89 = vector.extract_strided_slice %2 {offsets = [5, 0, 0], sizes = [1, 4, 4], strides = [1, 1, 1]} : vector<9x4x4xf32> to vector<1x4x4xf32>
    %90 = vector.shape_cast %89 : vector<1x4x4xf32> to vector<4x4xf32>
    %91 = vector.extract_strided_slice %44 {offsets = [0, 0, 0], sizes = [1, 4, 256], strides = [1, 1, 1]} : vector<2x4x256xf32> to vector<1x4x256xf32>
    %92 = vector.shape_cast %91 : vector<1x4x256xf32> to vector<4x256xf32>
    %cst_48 = arith.constant dense<0.000000e+00> : vector<4x256xf32>
    %93 = tpu.matmul %90, %92, %cst_48 {dimension_numbers = #tpu.dot_dimension_numbers<[1], [0], [0], [1], [0, 0, 1, 1], [], []>} : vector<4x4xf32>, vector<4x256xf32>, vector<4x256xf32> -> vector<4x256xf32>
    %94 = arith.addf %88, %93 : vector<4x256xf32>
    %95 = vector.extract_strided_slice %2 {offsets = [6, 0, 0], sizes = [1, 4, 4], strides = [1, 1, 1]} : vector<9x4x4xf32> to vector<1x4x4xf32>
    %96 = vector.shape_cast %95 : vector<1x4x4xf32> to vector<4x4xf32>
    %97 = vector.extract_strided_slice %49 {offsets = [0, 0, 0], sizes = [1, 4, 256], strides = [1, 1, 1]} : vector<2x4x256xf32> to vector<1x4x256xf32>
    %98 = vector.shape_cast %97 : vector<1x4x256xf32> to vector<4x256xf32>
    %cst_49 = arith.constant dense<0.000000e+00> : vector<4x256xf32>
    %99 = tpu.matmul %96, %98, %cst_49 {dimension_numbers = #tpu.dot_dimension_numbers<[1], [0], [0], [1], [0, 0, 1, 1], [], []>} : vector<4x4xf32>, vector<4x256xf32>, vector<4x256xf32> -> vector<4x256xf32>
    %100 = arith.addf %94, %99 : vector<4x256xf32>
    %101 = vector.extract_strided_slice %2 {offsets = [7, 0, 0], sizes = [1, 4, 4], strides = [1, 1, 1]} : vector<9x4x4xf32> to vector<1x4x4xf32>
    %102 = vector.shape_cast %101 : vector<1x4x4xf32> to vector<4x4xf32>
    %103 = vector.extract_strided_slice %54 {offsets = [0, 0, 0], sizes = [1, 4, 256], strides = [1, 1, 1]} : vector<2x4x256xf32> to vector<1x4x256xf32>
    %104 = vector.shape_cast %103 : vector<1x4x256xf32> to vector<4x256xf32>
    %cst_50 = arith.constant dense<0.000000e+00> : vector<4x256xf32>
    %105 = tpu.matmul %102, %104, %cst_50 {dimension_numbers = #tpu.dot_dimension_numbers<[1], [0], [0], [1], [0, 0, 1, 1], [], []>} : vector<4x4xf32>, vector<4x256xf32>, vector<4x256xf32> -> vector<4x256xf32>
    %106 = arith.addf %100, %105 : vector<4x256xf32>
    %107 = vector.extract_strided_slice %2 {offsets = [8, 0, 0], sizes = [1, 4, 4], strides = [1, 1, 1]} : vector<9x4x4xf32> to vector<1x4x4xf32>
    %108 = vector.shape_cast %107 : vector<1x4x4xf32> to vector<4x4xf32>
    %109 = vector.extract_strided_slice %59 {offsets = [0, 0, 0], sizes = [1, 4, 256], strides = [1, 1, 1]} : vector<2x4x256xf32> to vector<1x4x256xf32>
    %110 = vector.shape_cast %109 : vector<1x4x256xf32> to vector<4x256xf32>
    %cst_51 = arith.constant dense<0.000000e+00> : vector<4x256xf32>
    %111 = tpu.matmul %108, %110, %cst_51 {dimension_numbers = #tpu.dot_dimension_numbers<[1], [0], [0], [1], [0, 0, 1, 1], [], []>} : vector<4x4xf32>, vector<4x256xf32>, vector<4x256xf32> -> vector<4x256xf32>
    %112 = arith.addf %106, %111 : vector<4x256xf32>
    %113 = vector.extract_strided_slice %2 {offsets = [0, 0, 0], sizes = [1, 4, 4], strides = [1, 1, 1]} : vector<9x4x4xf32> to vector<1x4x4xf32>
    %114 = vector.shape_cast %113 : vector<1x4x4xf32> to vector<4x4xf32>
    %115 = vector.extract_strided_slice %19 {offsets = [1, 0, 0], sizes = [1, 4, 256], strides = [1, 1, 1]} : vector<2x4x256xf32> to vector<1x4x256xf32>
    %116 = vector.shape_cast %115 : vector<1x4x256xf32> to vector<4x256xf32>
    %cst_52 = arith.constant dense<0.000000e+00> : vector<4x256xf32>
    %117 = tpu.matmul %114, %116, %cst_52 {dimension_numbers = #tpu.dot_dimension_numbers<[1], [0], [0], [1], [0, 0, 1, 1], [], []>} : vector<4x4xf32>, vector<4x256xf32>, vector<4x256xf32> -> vector<4x256xf32>
    %118 = vector.extract_strided_slice %2 {offsets = [1, 0, 0], sizes = [1, 4, 4], strides = [1, 1, 1]} : vector<9x4x4xf32> to vector<1x4x4xf32>
    %119 = vector.shape_cast %118 : vector<1x4x4xf32> to vector<4x4xf32>
    %120 = vector.extract_strided_slice %24 {offsets = [1, 0, 0], sizes = [1, 4, 256], strides = [1, 1, 1]} : vector<2x4x256xf32> to vector<1x4x256xf32>
    %121 = vector.shape_cast %120 : vector<1x4x256xf32> to vector<4x256xf32>
    %cst_53 = arith.constant dense<0.000000e+00> : vector<4x256xf32>
    %122 = tpu.matmul %119, %121, %cst_53 {dimension_numbers = #tpu.dot_dimension_numbers<[1], [0], [0], [1], [0, 0, 1, 1], [], []>} : vector<4x4xf32>, vector<4x256xf32>, vector<4x256xf32> -> vector<4x256xf32>
    %123 = arith.addf %117, %122 : vector<4x256xf32>
    %124 = vector.extract_strided_slice %2 {offsets = [2, 0, 0], sizes = [1, 4, 4], strides = [1, 1, 1]} : vector<9x4x4xf32> to vector<1x4x4xf32>
    %125 = vector.shape_cast %124 : vector<1x4x4xf32> to vector<4x4xf32>
    %126 = vector.extract_strided_slice %29 {offsets = [1, 0, 0], sizes = [1, 4, 256], strides = [1, 1, 1]} : vector<2x4x256xf32> to vector<1x4x256xf32>
    %127 = vector.shape_cast %126 : vector<1x4x256xf32> to vector<4x256xf32>
    %cst_54 = arith.constant dense<0.000000e+00> : vector<4x256xf32>
    %128 = tpu.matmul %125, %127, %cst_54 {dimension_numbers = #tpu.dot_dimension_numbers<[1], [0], [0], [1], [0, 0, 1, 1], [], []>} : vector<4x4xf32>, vector<4x256xf32>, vector<4x256xf32> -> vector<4x256xf32>
    %129 = arith.addf %123, %128 : vector<4x256xf32>
    %130 = vector.extract_strided_slice %2 {offsets = [3, 0, 0], sizes = [1, 4, 4], strides = [1, 1, 1]} : vector<9x4x4xf32> to vector<1x4x4xf32>
    %131 = vector.shape_cast %130 : vector<1x4x4xf32> to vector<4x4xf32>
    %132 = vector.extract_strided_slice %34 {offsets = [1, 0, 0], sizes = [1, 4, 256], strides = [1, 1, 1]} : vector<2x4x256xf32> to vector<1x4x256xf32>
    %133 = vector.shape_cast %132 : vector<1x4x256xf32> to vector<4x256xf32>
    %cst_55 = arith.constant dense<0.000000e+00> : vector<4x256xf32>
    %134 = tpu.matmul %131, %133, %cst_55 {dimension_numbers = #tpu.dot_dimension_numbers<[1], [0], [0], [1], [0, 0, 1, 1], [], []>} : vector<4x4xf32>, vector<4x256xf32>, vector<4x256xf32> -> vector<4x256xf32>
    %135 = arith.addf %129, %134 : vector<4x256xf32>
    %136 = vector.extract_strided_slice %2 {offsets = [4, 0, 0], sizes = [1, 4, 4], strides = [1, 1, 1]} : vector<9x4x4xf32> to vector<1x4x4xf32>
    %137 = vector.shape_cast %136 : vector<1x4x4xf32> to vector<4x4xf32>
    %138 = vector.extract_strided_slice %39 {offsets = [1, 0, 0], sizes = [1, 4, 256], strides = [1, 1, 1]} : vector<2x4x256xf32> to vector<1x4x256xf32>
    %139 = vector.shape_cast %138 : vector<1x4x256xf32> to vector<4x256xf32>
    %cst_56 = arith.constant dense<0.000000e+00> : vector<4x256xf32>
    %140 = tpu.matmul %137, %139, %cst_56 {dimension_numbers = #tpu.dot_dimension_numbers<[1], [0], [0], [1], [0, 0, 1, 1], [], []>} : vector<4x4xf32>, vector<4x256xf32>, vector<4x256xf32> -> vector<4x256xf32>
    %141 = arith.addf %135, %140 : vector<4x256xf32>
    %142 = vector.extract_strided_slice %2 {offsets = [5, 0, 0], sizes = [1, 4, 4], strides = [1, 1, 1]} : vector<9x4x4xf32> to vector<1x4x4xf32>
    %143 = vector.shape_cast %142 : vector<1x4x4xf32> to vector<4x4xf32>
    %144 = vector.extract_strided_slice %44 {offsets = [1, 0, 0], sizes = [1, 4, 256], strides = [1, 1, 1]} : vector<2x4x256xf32> to vector<1x4x256xf32>
    %145 = vector.shape_cast %144 : vector<1x4x256xf32> to vector<4x256xf32>
    %cst_57 = arith.constant dense<0.000000e+00> : vector<4x256xf32>
    %146 = tpu.matmul %143, %145, %cst_57 {dimension_numbers = #tpu.dot_dimension_numbers<[1], [0], [0], [1], [0, 0, 1, 1], [], []>} : vector<4x4xf32>, vector<4x256xf32>, vector<4x256xf32> -> vector<4x256xf32>
    %147 = arith.addf %141, %146 : vector<4x256xf32>
    %148 = vector.extract_strided_slice %2 {offsets = [6, 0, 0], sizes = [1, 4, 4], strides = [1, 1, 1]} : vector<9x4x4xf32> to vector<1x4x4xf32>
    %149 = vector.shape_cast %148 : vector<1x4x4xf32> to vector<4x4xf32>
    %150 = vector.extract_strided_slice %49 {offsets = [1, 0, 0], sizes = [1, 4, 256], strides = [1, 1, 1]} : vector<2x4x256xf32> to vector<1x4x256xf32>
    %151 = vector.shape_cast %150 : vector<1x4x256xf32> to vector<4x256xf32>
    %cst_58 = arith.constant dense<0.000000e+00> : vector<4x256xf32>
    %152 = tpu.matmul %149, %151, %cst_58 {dimension_numbers = #tpu.dot_dimension_numbers<[1], [0], [0], [1], [0, 0, 1, 1], [], []>} : vector<4x4xf32>, vector<4x256xf32>, vector<4x256xf32> -> vector<4x256xf32>
    %153 = arith.addf %147, %152 : vector<4x256xf32>
    %154 = vector.extract_strided_slice %2 {offsets = [7, 0, 0], sizes = [1, 4, 4], strides = [1, 1, 1]} : vector<9x4x4xf32> to vector<1x4x4xf32>
    %155 = vector.shape_cast %154 : vector<1x4x4xf32> to vector<4x4xf32>
    %156 = vector.extract_strided_slice %54 {offsets = [1, 0, 0], sizes = [1, 4, 256], strides = [1, 1, 1]} : vector<2x4x256xf32> to vector<1x4x256xf32>
    %157 = vector.shape_cast %156 : vector<1x4x256xf32> to vector<4x256xf32>
    %cst_59 = arith.constant dense<0.000000e+00> : vector<4x256xf32>
    %158 = tpu.matmul %155, %157, %cst_59 {dimension_numbers = #tpu.dot_dimension_numbers<[1], [0], [0], [1], [0, 0, 1, 1], [], []>} : vector<4x4xf32>, vector<4x256xf32>, vector<4x256xf32> -> vector<4x256xf32>
    %159 = arith.addf %153, %158 : vector<4x256xf32>
    %160 = vector.extract_strided_slice %2 {offsets = [8, 0, 0], sizes = [1, 4, 4], strides = [1, 1, 1]} : vector<9x4x4xf32> to vector<1x4x4xf32>
    %161 = vector.shape_cast %160 : vector<1x4x4xf32> to vector<4x4xf32>
    %162 = vector.extract_strided_slice %59 {offsets = [1, 0, 0], sizes = [1, 4, 256], strides = [1, 1, 1]} : vector<2x4x256xf32> to vector<1x4x256xf32>
    %163 = vector.shape_cast %162 : vector<1x4x256xf32> to vector<4x256xf32>
    %cst_60 = arith.constant dense<0.000000e+00> : vector<4x256xf32>
    %164 = tpu.matmul %161, %163, %cst_60 {dimension_numbers = #tpu.dot_dimension_numbers<[1], [0], [0], [1], [0, 0, 1, 1], [], []>} : vector<4x4xf32>, vector<4x256xf32>, vector<4x256xf32> -> vector<4x256xf32>
    %165 = arith.addf %159, %164 : vector<4x256xf32>
    %166 = vector.shape_cast %112 : vector<4x256xf32> to vector<1x4x256xf32>
    %167 = vector.shape_cast %165 : vector<4x256xf32> to vector<1x4x256xf32>
    %168 = tpu.concatenate %166, %167 in 0 : vector<1x4x256xf32>, vector<1x4x256xf32> -> vector<2x4x256xf32>
    %169 = vector.broadcast %6 : vector<1x4x1xf32> to vector<2x4x256xf32>
    %170 = arith.addf %168, %169 : vector<2x4x256xf32>
    %171 = arith.subf %1, %170 : vector<2x4x256xf32>
    %cst_61 = arith.constant dense<0.000000e+00> : vector<2x4xf32>
    %172 = vector.multi_reduction <add>, %171, %cst_61 [2] : vector<2x4x256xf32> to vector<2x4xf32>
    %173 = vector.shape_cast %172 : vector<2x4xf32> to vector<2x4x1xf32>
    %cst_62 = arith.constant dense<0.000000e+00> : vector<4x1xf32>
    %174 = vector.multi_reduction <add>, %173, %cst_62 [0] : vector<2x4x1xf32> to vector<4x1xf32>
    %175 = vector.shape_cast %174 : vector<4x1xf32> to vector<1x4x1xf32>
    %176 = arith.mulf %171, %171 : vector<2x4x256xf32>
    %cst_63 = arith.constant dense<0.000000e+00> : vector<2x4xf32>
    %177 = vector.multi_reduction <add>, %176, %cst_63 [2] : vector<2x4x256xf32> to vector<2x4xf32>
    %178 = vector.shape_cast %177 : vector<2x4xf32> to vector<2x4x1xf32>
    %cst_64 = arith.constant dense<0.000000e+00> : vector<4x1xf32>
    %179 = vector.multi_reduction <add>, %178, %cst_64 [0] : vector<2x4x1xf32> to vector<4x1xf32>
    %180 = vector.shape_cast %179 : vector<4x1xf32> to vector<1x4x1xf32>
    %cst_65 = arith.constant 0.001953125 : f32
    %181 = vector.broadcast %cst_65 : f32 to vector<1x4x1xf32>
    %182 = arith.mulf %175, %181 : vector<1x4x1xf32>
    %cst_66 = arith.constant 0.001953125 : f32
    %183 = vector.broadcast %cst_66 : f32 to vector<1x4x1xf32>
    %184 = arith.mulf %180, %183 : vector<1x4x1xf32>
    %185 = arith.mulf %182, %182 : vector<1x4x1xf32>
    %186 = arith.subf %184, %185 : vector<1x4x1xf32>
    %cst_67 = arith.constant 0.000000e+00 : f32
    %187 = vector.broadcast %cst_67 : f32 to vector<1x4x1xf32>
    %188 = arith.maximumf %186, %187 : vector<1x4x1xf32>
    %189 = vector.broadcast %182 : vector<1x4x1xf32> to vector<2x4x256xf32>
    %190 = arith.subf %171, %189 : vector<2x4x256xf32>
    %cst_68 = arith.constant 9.99999974E-6 : f32
    %191 = vector.broadcast %cst_68 : f32 to vector<1x4x1xf32>
    %192 = arith.addf %188, %191 : vector<1x4x1xf32>
    %193 = math.rsqrt %192 : vector<1x4x1xf32>
    %194 = arith.mulf %193, %8 : vector<1x4x1xf32>
    %195 = vector.broadcast %194 : vector<1x4x1xf32> to vector<2x4x256xf32>
    %196 = arith.mulf %190, %195 : vector<2x4x256xf32>
    %197 = vector.broadcast %9 : vector<1x4x1xf32> to vector<2x4x256xf32>
    %198 = arith.addf %196, %197 : vector<2x4x256xf32>
    %cst_69 = arith.constant 0.000000e+00 : f32
    %199 = vector.broadcast %cst_69 : f32 to vector<2x4x256xf32>
    %200 = arith.maximumf %198, %199 : vector<2x4x256xf32>
    %c0_70 = arith.constant 0 : index
    %c0_71 = arith.constant 0 : index
    %c17_72 = arith.constant 17 : index
    %201 = vector.load %arg7[%c0_70, %c0_71, %c17_72] : memref<2x4x290xf32, #tpu.memory_space<vmem>>, vector<2x4x256xf32>
    tpu.vector_store %arg7[%c0_70, %c0_71, %c17_72], %200 {strides = array<i32>} : memref<2x4x290xf32, #tpu.memory_space<vmem>>, vector<2x4x256xf32>,
    %c0_73 = arith.constant 0 : index
    %c0_74 = arith.constant 0 : index
    %c0_75 = arith.constant 0 : index
    %202 = vector.load %arg7[%c0_73, %c0_74, %c0_75] : memref<2x4x290xf32, #tpu.memory_space<vmem>>, vector<2x4x256xf32>
    %203 = vector.extract_strided_slice %5 {offsets = [0, 0, 0, 0], sizes = [1, 1, 1, 256], strides = [1, 1, 1, 1]} : vector<9x1x1x256xf32> to vector<1x1x1x256xf32>
    %204 = vector.shape_cast %203 : vector<1x1x1x256xf32> to vector<1x1x256xf32>
    %205 = vector.broadcast %204 : vector<1x1x256xf32> to vector<2x4x256xf32>
    %206 = arith.mulf %202, %205 : vector<2x4x256xf32>
    %c0_76 = arith.constant 0 : index
    %c0_77 = arith.constant 0 : index
    %c1_78 = arith.constant 1 : index
    %207 = vector.load %arg7[%c0_76, %c0_77, %c1_78] : memref<2x4x290xf32, #tpu.memory_space<vmem>>, vector<2x4x256xf32>
    %208 = vector.extract_strided_slice %5 {offsets = [1, 0, 0, 0], sizes = [1, 1, 1, 256], strides = [1, 1, 1, 1]} : vector<9x1x1x256xf32> to vector<1x1x1x256xf32>
    %209 = vector.shape_cast %208 : vector<1x1x1x256xf32> to vector<1x1x256xf32>
    %210 = vector.broadcast %209 : vector<1x1x256xf32> to vector<2x4x256xf32>
    %211 = arith.mulf %207, %210 : vector<2x4x256xf32>
    %c0_79 = arith.constant 0 : index
    %c0_80 = arith.constant 0 : index
    %c2_81 = arith.constant 2 : index
    %212 = vector.load %arg7[%c0_79, %c0_80, %c2_81] : memref<2x4x290xf32, #tpu.memory_space<vmem>>, vector<2x4x256xf32>
    %213 = vector.extract_strided_slice %5 {offsets = [2, 0, 0, 0], sizes = [1, 1, 1, 256], strides = [1, 1, 1, 1]} : vector<9x1x1x256xf32> to vector<1x1x1x256xf32>
    %214 = vector.shape_cast %213 : vector<1x1x1x256xf32> to vector<1x1x256xf32>
    %215 = vector.broadcast %214 : vector<1x1x256xf32> to vector<2x4x256xf32>
    %216 = arith.mulf %212, %215 : vector<2x4x256xf32>
    %c0_82 = arith.constant 0 : index
    %c0_83 = arith.constant 0 : index
    %c16_84 = arith.constant 16 : index
    %217 = vector.load %arg7[%c0_82, %c0_83, %c16_84] : memref<2x4x290xf32, #tpu.memory_space<vmem>>, vector<2x4x256xf32>
    %218 = vector.extract_strided_slice %5 {offsets = [3, 0, 0, 0], sizes = [1, 1, 1, 256], strides = [1, 1, 1, 1]} : vector<9x1x1x256xf32> to vector<1x1x1x256xf32>
    %219 = vector.shape_cast %218 : vector<1x1x1x256xf32> to vector<1x1x256xf32>
    %220 = vector.broadcast %219 : vector<1x1x256xf32> to vector<2x4x256xf32>
    %221 = arith.mulf %217, %220 : vector<2x4x256xf32>
    %c0_85 = arith.constant 0 : index
    %c0_86 = arith.constant 0 : index
    %c17_87 = arith.constant 17 : index
    %222 = vector.load %arg7[%c0_85, %c0_86, %c17_87] : memref<2x4x290xf32, #tpu.memory_space<vmem>>, vector<2x4x256xf32>
    %223 = vector.extract_strided_slice %5 {offsets = [4, 0, 0, 0], sizes = [1, 1, 1, 256], strides = [1, 1, 1, 1]} : vector<9x1x1x256xf32> to vector<1x1x1x256xf32>
    %224 = vector.shape_cast %223 : vector<1x1x1x256xf32> to vector<1x1x256xf32>
    %225 = vector.broadcast %224 : vector<1x1x256xf32> to vector<2x4x256xf32>
    %226 = arith.mulf %222, %225 : vector<2x4x256xf32>
    %c0_88 = arith.constant 0 : index
    %c0_89 = arith.constant 0 : index
    %c18_90 = arith.constant 18 : index
    %227 = vector.load %arg7[%c0_88, %c0_89, %c18_90] : memref<2x4x290xf32, #tpu.memory_space<vmem>>, vector<2x4x256xf32>
    %228 = vector.extract_strided_slice %5 {offsets = [5, 0, 0, 0], sizes = [1, 1, 1, 256], strides = [1, 1, 1, 1]} : vector<9x1x1x256xf32> to vector<1x1x1x256xf32>
    %229 = vector.shape_cast %228 : vector<1x1x1x256xf32> to vector<1x1x256xf32>
    %230 = vector.broadcast %229 : vector<1x1x256xf32> to vector<2x4x256xf32>
    %231 = arith.mulf %227, %230 : vector<2x4x256xf32>
    %c0_91 = arith.constant 0 : index
    %c0_92 = arith.constant 0 : index
    %c32_93 = arith.constant 32 : index
    %232 = vector.load %arg7[%c0_91, %c0_92, %c32_93] : memref<2x4x290xf32, #tpu.memory_space<vmem>>, vector<2x4x256xf32>
    %233 = vector.extract_strided_slice %5 {offsets = [6, 0, 0, 0], sizes = [1, 1, 1, 256], strides = [1, 1, 1, 1]} : vector<9x1x1x256xf32> to vector<1x1x1x256xf32>
    %234 = vector.shape_cast %233 : vector<1x1x1x256xf32> to vector<1x1x256xf32>
    %235 = vector.broadcast %234 : vector<1x1x256xf32> to vector<2x4x256xf32>
    %236 = arith.mulf %232, %235 : vector<2x4x256xf32>
    %c0_94 = arith.constant 0 : index
    %c0_95 = arith.constant 0 : index
    %c33_96 = arith.constant 33 : index
    %237 = vector.load %arg7[%c0_94, %c0_95, %c33_96] : memref<2x4x290xf32, #tpu.memory_space<vmem>>, vector<2x4x256xf32>
    %238 = vector.extract_strided_slice %5 {offsets = [7, 0, 0, 0], sizes = [1, 1, 1, 256], strides = [1, 1, 1, 1]} : vector<9x1x1x256xf32> to vector<1x1x1x256xf32>
    %239 = vector.shape_cast %238 : vector<1x1x1x256xf32> to vector<1x1x256xf32>
    %240 = vector.broadcast %239 : vector<1x1x256xf32> to vector<2x4x256xf32>
    %241 = arith.mulf %237, %240 : vector<2x4x256xf32>
    %c0_97 = arith.constant 0 : index
    %c0_98 = arith.constant 0 : index
    %c34_99 = arith.constant 34 : index
    %242 = vector.load %arg7[%c0_97, %c0_98, %c34_99] : memref<2x4x290xf32, #tpu.memory_space<vmem>>, vector<2x4x256xf32>
    %243 = vector.extract_strided_slice %5 {offsets = [8, 0, 0, 0], sizes = [1, 1, 1, 256], strides = [1, 1, 1, 1]} : vector<9x1x1x256xf32> to vector<1x1x1x256xf32>
    %244 = vector.shape_cast %243 : vector<1x1x1x256xf32> to vector<1x1x256xf32>
    %245 = vector.broadcast %244 : vector<1x1x256xf32> to vector<2x4x256xf32>
    %246 = arith.mulf %242, %245 : vector<2x4x256xf32>
    %247 = vector.extract_strided_slice %3 {offsets = [0, 0, 0], sizes = [1, 4, 4], strides = [1, 1, 1]} : vector<9x4x4xf32> to vector<1x4x4xf32>
    %248 = vector.shape_cast %247 : vector<1x4x4xf32> to vector<4x4xf32>
    %249 = vector.extract_strided_slice %206 {offsets = [0, 0, 0], sizes = [1, 4, 256], strides = [1, 1, 1]} : vector<2x4x256xf32> to vector<1x4x256xf32>
    %250 = vector.shape_cast %249 : vector<1x4x256xf32> to vector<4x256xf32>
    %cst_100 = arith.constant dense<0.000000e+00> : vector<4x256xf32>
    %251 = tpu.matmul %248, %250, %cst_100 {dimension_numbers = #tpu.dot_dimension_numbers<[1], [0], [0], [1], [0, 0, 1, 1], [], []>} : vector<4x4xf32>, vector<4x256xf32>, vector<4x256xf32> -> vector<4x256xf32>
    %252 = vector.extract_strided_slice %3 {offsets = [1, 0, 0], sizes = [1, 4, 4], strides = [1, 1, 1]} : vector<9x4x4xf32> to vector<1x4x4xf32>
    %253 = vector.shape_cast %252 : vector<1x4x4xf32> to vector<4x4xf32>
    %254 = vector.extract_strided_slice %211 {offsets = [0, 0, 0], sizes = [1, 4, 256], strides = [1, 1, 1]} : vector<2x4x256xf32> to vector<1x4x256xf32>
    %255 = vector.shape_cast %254 : vector<1x4x256xf32> to vector<4x256xf32>
    %cst_101 = arith.constant dense<0.000000e+00> : vector<4x256xf32>
    %256 = tpu.matmul %253, %255, %cst_101 {dimension_numbers = #tpu.dot_dimension_numbers<[1], [0], [0], [1], [0, 0, 1, 1], [], []>} : vector<4x4xf32>, vector<4x256xf32>, vector<4x256xf32> -> vector<4x256xf32>
    %257 = arith.addf %251, %256 : vector<4x256xf32>
    %258 = vector.extract_strided_slice %3 {offsets = [2, 0, 0], sizes = [1, 4, 4], strides = [1, 1, 1]} : vector<9x4x4xf32> to vector<1x4x4xf32>
    %259 = vector.shape_cast %258 : vector<1x4x4xf32> to vector<4x4xf32>
    %260 = vector.extract_strided_slice %216 {offsets = [0, 0, 0], sizes = [1, 4, 256], strides = [1, 1, 1]} : vector<2x4x256xf32> to vector<1x4x256xf32>
    %261 = vector.shape_cast %260 : vector<1x4x256xf32> to vector<4x256xf32>
    %cst_102 = arith.constant dense<0.000000e+00> : vector<4x256xf32>
    %262 = tpu.matmul %259, %261, %cst_102 {dimension_numbers = #tpu.dot_dimension_numbers<[1], [0], [0], [1], [0, 0, 1, 1], [], []>} : vector<4x4xf32>, vector<4x256xf32>, vector<4x256xf32> -> vector<4x256xf32>
    %263 = arith.addf %257, %262 : vector<4x256xf32>
    %264 = vector.extract_strided_slice %3 {offsets = [3, 0, 0], sizes = [1, 4, 4], strides = [1, 1, 1]} : vector<9x4x4xf32> to vector<1x4x4xf32>
    %265 = vector.shape_cast %264 : vector<1x4x4xf32> to vector<4x4xf32>
    %266 = vector.extract_strided_slice %221 {offsets = [0, 0, 0], sizes = [1, 4, 256], strides = [1, 1, 1]} : vector<2x4x256xf32> to vector<1x4x256xf32>
    %267 = vector.shape_cast %266 : vector<1x4x256xf32> to vector<4x256xf32>
    %cst_103 = arith.constant dense<0.000000e+00> : vector<4x256xf32>
    %268 = tpu.matmul %265, %267, %cst_103 {dimension_numbers = #tpu.dot_dimension_numbers<[1], [0], [0], [1], [0, 0, 1, 1], [], []>} : vector<4x4xf32>, vector<4x256xf32>, vector<4x256xf32> -> vector<4x256xf32>
    %269 = arith.addf %263, %268 : vector<4x256xf32>
    %270 = vector.extract_strided_slice %3 {offsets = [4, 0, 0], sizes = [1, 4, 4], strides = [1, 1, 1]} : vector<9x4x4xf32> to vector<1x4x4xf32>
    %271 = vector.shape_cast %270 : vector<1x4x4xf32> to vector<4x4xf32>
    %272 = vector.extract_strided_slice %226 {offsets = [0, 0, 0], sizes = [1, 4, 256], strides = [1, 1, 1]} : vector<2x4x256xf32> to vector<1x4x256xf32>
    %273 = vector.shape_cast %272 : vector<1x4x256xf32> to vector<4x256xf32>
    %cst_104 = arith.constant dense<0.000000e+00> : vector<4x256xf32>
    %274 = tpu.matmul %271, %273, %cst_104 {dimension_numbers = #tpu.dot_dimension_numbers<[1], [0], [0], [1], [0, 0, 1, 1], [], []>} : vector<4x4xf32>, vector<4x256xf32>, vector<4x256xf32> -> vector<4x256xf32>
    %275 = arith.addf %269, %274 : vector<4x256xf32>
    %276 = vector.extract_strided_slice %3 {offsets = [5, 0, 0], sizes = [1, 4, 4], strides = [1, 1, 1]} : vector<9x4x4xf32> to vector<1x4x4xf32>
    %277 = vector.shape_cast %276 : vector<1x4x4xf32> to vector<4x4xf32>
    %278 = vector.extract_strided_slice %231 {offsets = [0, 0, 0], sizes = [1, 4, 256], strides = [1, 1, 1]} : vector<2x4x256xf32> to vector<1x4x256xf32>
    %279 = vector.shape_cast %278 : vector<1x4x256xf32> to vector<4x256xf32>
    %cst_105 = arith.constant dense<0.000000e+00> : vector<4x256xf32>
    %280 = tpu.matmul %277, %279, %cst_105 {dimension_numbers = #tpu.dot_dimension_numbers<[1], [0], [0], [1], [0, 0, 1, 1], [], []>} : vector<4x4xf32>, vector<4x256xf32>, vector<4x256xf32> -> vector<4x256xf32>
    %281 = arith.addf %275, %280 : vector<4x256xf32>
    %282 = vector.extract_strided_slice %3 {offsets = [6, 0, 0], sizes = [1, 4, 4], strides = [1, 1, 1]} : vector<9x4x4xf32> to vector<1x4x4xf32>
    %283 = vector.shape_cast %282 : vector<1x4x4xf32> to vector<4x4xf32>
    %284 = vector.extract_strided_slice %236 {offsets = [0, 0, 0], sizes = [1, 4, 256], strides = [1, 1, 1]} : vector<2x4x256xf32> to vector<1x4x256xf32>
    %285 = vector.shape_cast %284 : vector<1x4x256xf32> to vector<4x256xf32>
    %cst_106 = arith.constant dense<0.000000e+00> : vector<4x256xf32>
    %286 = tpu.matmul %283, %285, %cst_106 {dimension_numbers = #tpu.dot_dimension_numbers<[1], [0], [0], [1], [0, 0, 1, 1], [], []>} : vector<4x4xf32>, vector<4x256xf32>, vector<4x256xf32> -> vector<4x256xf32>
    %287 = arith.addf %281, %286 : vector<4x256xf32>
    %288 = vector.extract_strided_slice %3 {offsets = [7, 0, 0], sizes = [1, 4, 4], strides = [1, 1, 1]} : vector<9x4x4xf32> to vector<1x4x4xf32>
    %289 = vector.shape_cast %288 : vector<1x4x4xf32> to vector<4x4xf32>
    %290 = vector.extract_strided_slice %241 {offsets = [0, 0, 0], sizes = [1, 4, 256], strides = [1, 1, 1]} : vector<2x4x256xf32> to vector<1x4x256xf32>
    %291 = vector.shape_cast %290 : vector<1x4x256xf32> to vector<4x256xf32>
    %cst_107 = arith.constant dense<0.000000e+00> : vector<4x256xf32>
    %292 = tpu.matmul %289, %291, %cst_107 {dimension_numbers = #tpu.dot_dimension_numbers<[1], [0], [0], [1], [0, 0, 1, 1], [], []>} : vector<4x4xf32>, vector<4x256xf32>, vector<4x256xf32> -> vector<4x256xf32>
    %293 = arith.addf %287, %292 : vector<4x256xf32>
    %294 = vector.extract_strided_slice %3 {offsets = [8, 0, 0], sizes = [1, 4, 4], strides = [1, 1, 1]} : vector<9x4x4xf32> to vector<1x4x4xf32>
    %295 = vector.shape_cast %294 : vector<1x4x4xf32> to vector<4x4xf32>
    %296 = vector.extract_strided_slice %246 {offsets = [0, 0, 0], sizes = [1, 4, 256], strides = [1, 1, 1]} : vector<2x4x256xf32> to vector<1x4x256xf32>
    %297 = vector.shape_cast %296 : vector<1x4x256xf32> to vector<4x256xf32>
    %cst_108 = arith.constant dense<0.000000e+00> : vector<4x256xf32>
    %298 = tpu.matmul %295, %297, %cst_108 {dimension_numbers = #tpu.dot_dimension_numbers<[1], [0], [0], [1], [0, 0, 1, 1], [], []>} : vector<4x4xf32>, vector<4x256xf32>, vector<4x256xf32> -> vector<4x256xf32>
    %299 = arith.addf %293, %298 : vector<4x256xf32>
    %300 = vector.extract_strided_slice %3 {offsets = [0, 0, 0], sizes = [1, 4, 4], strides = [1, 1, 1]} : vector<9x4x4xf32> to vector<1x4x4xf32>
    %301 = vector.shape_cast %300 : vector<1x4x4xf32> to vector<4x4xf32>
    %302 = vector.extract_strided_slice %206 {offsets = [1, 0, 0], sizes = [1, 4, 256], strides = [1, 1, 1]} : vector<2x4x256xf32> to vector<1x4x256xf32>
    %303 = vector.shape_cast %302 : vector<1x4x256xf32> to vector<4x256xf32>
    %cst_109 = arith.constant dense<0.000000e+00> : vector<4x256xf32>
    %304 = tpu.matmul %301, %303, %cst_109 {dimension_numbers = #tpu.dot_dimension_numbers<[1], [0], [0], [1], [0, 0, 1, 1], [], []>} : vector<4x4xf32>, vector<4x256xf32>, vector<4x256xf32> -> vector<4x256xf32>
    %305 = vector.extract_strided_slice %3 {offsets = [1, 0, 0], sizes = [1, 4, 4], strides = [1, 1, 1]} : vector<9x4x4xf32> to vector<1x4x4xf32>
    %306 = vector.shape_cast %305 : vector<1x4x4xf32> to vector<4x4xf32>
    %307 = vector.extract_strided_slice %211 {offsets = [1, 0, 0], sizes = [1, 4, 256], strides = [1, 1, 1]} : vector<2x4x256xf32> to vector<1x4x256xf32>
    %308 = vector.shape_cast %307 : vector<1x4x256xf32> to vector<4x256xf32>
    %cst_110 = arith.constant dense<0.000000e+00> : vector<4x256xf32>
    %309 = tpu.matmul %306, %308, %cst_110 {dimension_numbers = #tpu.dot_dimension_numbers<[1], [0], [0], [1], [0, 0, 1, 1], [], []>} : vector<4x4xf32>, vector<4x256xf32>, vector<4x256xf32> -> vector<4x256xf32>
    %310 = arith.addf %304, %309 : vector<4x256xf32>
    %311 = vector.extract_strided_slice %3 {offsets = [2, 0, 0], sizes = [1, 4, 4], strides = [1, 1, 1]} : vector<9x4x4xf32> to vector<1x4x4xf32>
    %312 = vector.shape_cast %311 : vector<1x4x4xf32> to vector<4x4xf32>
    %313 = vector.extract_strided_slice %216 {offsets = [1, 0, 0], sizes = [1, 4, 256], strides = [1, 1, 1]} : vector<2x4x256xf32> to vector<1x4x256xf32>
    %314 = vector.shape_cast %313 : vector<1x4x256xf32> to vector<4x256xf32>
    %cst_111 = arith.constant dense<0.000000e+00> : vector<4x256xf32>
    %315 = tpu.matmul %312, %314, %cst_111 {dimension_numbers = #tpu.dot_dimension_numbers<[1], [0], [0], [1], [0, 0, 1, 1], [], []>} : vector<4x4xf32>, vector<4x256xf32>, vector<4x256xf32> -> vector<4x256xf32>
    %316 = arith.addf %310, %315 : vector<4x256xf32>
    %317 = vector.extract_strided_slice %3 {offsets = [3, 0, 0], sizes = [1, 4, 4], strides = [1, 1, 1]} : vector<9x4x4xf32> to vector<1x4x4xf32>
    %318 = vector.shape_cast %317 : vector<1x4x4xf32> to vector<4x4xf32>
    %319 = vector.extract_strided_slice %221 {offsets = [1, 0, 0], sizes = [1, 4, 256], strides = [1, 1, 1]} : vector<2x4x256xf32> to vector<1x4x256xf32>
    %320 = vector.shape_cast %319 : vector<1x4x256xf32> to vector<4x256xf32>
    %cst_112 = arith.constant dense<0.000000e+00> : vector<4x256xf32>
    %321 = tpu.matmul %318, %320, %cst_112 {dimension_numbers = #tpu.dot_dimension_numbers<[1], [0], [0], [1], [0, 0, 1, 1], [], []>} : vector<4x4xf32>, vector<4x256xf32>, vector<4x256xf32> -> vector<4x256xf32>
    %322 = arith.addf %316, %321 : vector<4x256xf32>
    %323 = vector.extract_strided_slice %3 {offsets = [4, 0, 0], sizes = [1, 4, 4], strides = [1, 1, 1]} : vector<9x4x4xf32> to vector<1x4x4xf32>
    %324 = vector.shape_cast %323 : vector<1x4x4xf32> to vector<4x4xf32>
    %325 = vector.extract_strided_slice %226 {offsets = [1, 0, 0], sizes = [1, 4, 256], strides = [1, 1, 1]} : vector<2x4x256xf32> to vector<1x4x256xf32>
    %326 = vector.shape_cast %325 : vector<1x4x256xf32> to vector<4x256xf32>
    %cst_113 = arith.constant dense<0.000000e+00> : vector<4x256xf32>
    %327 = tpu.matmul %324, %326, %cst_113 {dimension_numbers = #tpu.dot_dimension_numbers<[1], [0], [0], [1], [0, 0, 1, 1], [], []>} : vector<4x4xf32>, vector<4x256xf32>, vector<4x256xf32> -> vector<4x256xf32>
    %328 = arith.addf %322, %327 : vector<4x256xf32>
    %329 = vector.extract_strided_slice %3 {offsets = [5, 0, 0], sizes = [1, 4, 4], strides = [1, 1, 1]} : vector<9x4x4xf32> to vector<1x4x4xf32>
    %330 = vector.shape_cast %329 : vector<1x4x4xf32> to vector<4x4xf32>
    %331 = vector.extract_strided_slice %231 {offsets = [1, 0, 0], sizes = [1, 4, 256], strides = [1, 1, 1]} : vector<2x4x256xf32> to vector<1x4x256xf32>
    %332 = vector.shape_cast %331 : vector<1x4x256xf32> to vector<4x256xf32>
    %cst_114 = arith.constant dense<0.000000e+00> : vector<4x256xf32>
    %333 = tpu.matmul %330, %332, %cst_114 {dimension_numbers = #tpu.dot_dimension_numbers<[1], [0], [0], [1], [0, 0, 1, 1], [], []>} : vector<4x4xf32>, vector<4x256xf32>, vector<4x256xf32> -> vector<4x256xf32>
    %334 = arith.addf %328, %333 : vector<4x256xf32>
    %335 = vector.extract_strided_slice %3 {offsets = [6, 0, 0], sizes = [1, 4, 4], strides = [1, 1, 1]} : vector<9x4x4xf32> to vector<1x4x4xf32>
    %336 = vector.shape_cast %335 : vector<1x4x4xf32> to vector<4x4xf32>
    %337 = vector.extract_strided_slice %236 {offsets = [1, 0, 0], sizes = [1, 4, 256], strides = [1, 1, 1]} : vector<2x4x256xf32> to vector<1x4x256xf32>
    %338 = vector.shape_cast %337 : vector<1x4x256xf32> to vector<4x256xf32>
    %cst_115 = arith.constant dense<0.000000e+00> : vector<4x256xf32>
    %339 = tpu.matmul %336, %338, %cst_115 {dimension_numbers = #tpu.dot_dimension_numbers<[1], [0], [0], [1], [0, 0, 1, 1], [], []>} : vector<4x4xf32>, vector<4x256xf32>, vector<4x256xf32> -> vector<4x256xf32>
    %340 = arith.addf %334, %339 : vector<4x256xf32>
    %341 = vector.extract_strided_slice %3 {offsets = [7, 0, 0], sizes = [1, 4, 4], strides = [1, 1, 1]} : vector<9x4x4xf32> to vector<1x4x4xf32>
    %342 = vector.shape_cast %341 : vector<1x4x4xf32> to vector<4x4xf32>
    %343 = vector.extract_strided_slice %241 {offsets = [1, 0, 0], sizes = [1, 4, 256], strides = [1, 1, 1]} : vector<2x4x256xf32> to vector<1x4x256xf32>
    %344 = vector.shape_cast %343 : vector<1x4x256xf32> to vector<4x256xf32>
    %cst_116 = arith.constant dense<0.000000e+00> : vector<4x256xf32>
    %345 = tpu.matmul %342, %344, %cst_116 {dimension_numbers = #tpu.dot_dimension_numbers<[1], [0], [0], [1], [0, 0, 1, 1], [], []>} : vector<4x4xf32>, vector<4x256xf32>, vector<4x256xf32> -> vector<4x256xf32>
    %346 = arith.addf %340, %345 : vector<4x256xf32>
    %347 = vector.extract_strided_slice %3 {offsets = [8, 0, 0], sizes = [1, 4, 4], strides = [1, 1, 1]} : vector<9x4x4xf32> to vector<1x4x4xf32>
    %348 = vector.shape_cast %347 : vector<1x4x4xf32> to vector<4x4xf32>
    %349 = vector.extract_strided_slice %246 {offsets = [1, 0, 0], sizes = [1, 4, 256], strides = [1, 1, 1]} : vector<2x4x256xf32> to vector<1x4x256xf32>
    %350 = vector.shape_cast %349 : vector<1x4x256xf32> to vector<4x256xf32>
    %cst_117 = arith.constant dense<0.000000e+00> : vector<4x256xf32>
    %351 = tpu.matmul %348, %350, %cst_117 {dimension_numbers = #tpu.dot_dimension_numbers<[1], [0], [0], [1], [0, 0, 1, 1], [], []>} : vector<4x4xf32>, vector<4x256xf32>, vector<4x256xf32> -> vector<4x256xf32>
    %352 = arith.addf %346, %351 : vector<4x256xf32>
    %353 = vector.shape_cast %299 : vector<4x256xf32> to vector<1x4x256xf32>
    %354 = vector.shape_cast %352 : vector<4x256xf32> to vector<1x4x256xf32>
    %355 = tpu.concatenate %353, %354 in 0 : vector<1x4x256xf32>, vector<1x4x256xf32> -> vector<2x4x256xf32>
    %356 = vector.broadcast %7 : vector<1x4x1xf32> to vector<2x4x256xf32>
    %357 = arith.addf %355, %356 : vector<2x4x256xf32>
    %cst_118 = arith.constant dense<0.000000e+00> : vector<2x4xf32>
    %358 = vector.multi_reduction <add>, %357, %cst_118 [2] : vector<2x4x256xf32> to vector<2x4xf32>
    %359 = vector.shape_cast %358 : vector<2x4xf32> to vector<2x4x1xf32>
    %cst_119 = arith.constant dense<0.000000e+00> : vector<4x1xf32>
    %360 = vector.multi_reduction <add>, %359, %cst_119 [0] : vector<2x4x1xf32> to vector<4x1xf32>
    %361 = vector.shape_cast %360 : vector<4x1xf32> to vector<1x4x1xf32>
    %362 = arith.mulf %357, %357 : vector<2x4x256xf32>
    %cst_120 = arith.constant dense<0.000000e+00> : vector<2x4xf32>
    %363 = vector.multi_reduction <add>, %362, %cst_120 [2] : vector<2x4x256xf32> to vector<2x4xf32>
    %364 = vector.shape_cast %363 : vector<2x4xf32> to vector<2x4x1xf32>
    %cst_121 = arith.constant dense<0.000000e+00> : vector<4x1xf32>
    %365 = vector.multi_reduction <add>, %364, %cst_121 [0] : vector<2x4x1xf32> to vector<4x1xf32>
    %366 = vector.shape_cast %365 : vector<4x1xf32> to vector<1x4x1xf32>
    %cst_122 = arith.constant 0.001953125 : f32
    %367 = vector.broadcast %cst_122 : f32 to vector<1x4x1xf32>
    %368 = arith.mulf %361, %367 : vector<1x4x1xf32>
    %cst_123 = arith.constant 0.001953125 : f32
    %369 = vector.broadcast %cst_123 : f32 to vector<1x4x1xf32>
    %370 = arith.mulf %366, %369 : vector<1x4x1xf32>
    %371 = arith.mulf %368, %368 : vector<1x4x1xf32>
    %372 = arith.subf %370, %371 : vector<1x4x1xf32>
    %cst_124 = arith.constant 0.000000e+00 : f32
    %373 = vector.broadcast %cst_124 : f32 to vector<1x4x1xf32>
    %374 = arith.maximumf %372, %373 : vector<1x4x1xf32>
    %375 = vector.broadcast %368 : vector<1x4x1xf32> to vector<2x4x256xf32>
    %376 = arith.subf %357, %375 : vector<2x4x256xf32>
    %cst_125 = arith.constant 9.99999974E-6 : f32
    %377 = vector.broadcast %cst_125 : f32 to vector<1x4x1xf32>
    %378 = arith.addf %374, %377 : vector<1x4x1xf32>
    %379 = math.rsqrt %378 : vector<1x4x1xf32>
    %380 = arith.mulf %379, %10 : vector<1x4x1xf32>
    %381 = vector.broadcast %380 : vector<1x4x1xf32> to vector<2x4x256xf32>
    %382 = arith.mulf %376, %381 : vector<2x4x256xf32>
    %383 = vector.broadcast %11 : vector<1x4x1xf32> to vector<2x4x256xf32>
    %384 = arith.addf %382, %383 : vector<2x4x256xf32>
    %cst_126 = arith.constant 0.000000e+00 : f32
    %385 = vector.broadcast %cst_126 : f32 to vector<2x4x256xf32>
    %386 = arith.maximumf %384, %385 : vector<2x4x256xf32>
    %387 = arith.addf %0, %386 : vector<2x4x256xf32>
    %c0_127 = arith.constant 0 : index
    %c0_128 = arith.constant 0 : index
    %c0_129 = arith.constant 0 : index
    %388 = vector.load %arg6[%c0_127, %c0_128, %c0_129] : memref<2x4x256xf32, #tpu.memory_space<vmem>>, vector<2x4x256xf32>
    tpu.vector_store %arg6[%c0_127, %c0_128, %c0_129], %387 {strides = array<i32>} : memref<2x4x256xf32, #tpu.memory_space<vmem>>, vector<2x4x256xf32>,
    return
  }
}

</mosaic_0001>

<bundles_post_ra>
// kernel: tpu_custom_call.1
= control target key start
LH: loop header
LB: loop body
LE: loop exit
PB: predicated region body
PF: predicated region fallthrough
CT: control target
= control target key end

     0   :  { %v87_v1 = vlaneseq  ;;  %s3946_s23 = smov 17   ;;  %v3947_v10 = vmov 0.0   ;;  %vm57_vm0 = vcmask 273408   ;;  %s4721_s0 = inlined_call_operand.vmem [shape: f32[2,4,256], index: 0, kind: input, shape index: {}]   ;;  %s4722_s1 = inlined_call_operand.vmem [shape: f32[2,4,256], index: 1, kind: input, shape index: {}]   ;;  %s4723_s2 = inlined_call_operand.vmem [shape: f32[9,4,4], index: 2, kind: input, shape index: {}]   ;;  %s4724_s3 = inlined_call_operand.vmem [shape: f32[9,4,4], index: 3, kind: input, shape index: {}]   ;;  %s4725_s4 = inlined_call_operand.vmem [shape: f32[1,4,6], index: 4, kind: input, shape index: {}]   ;;  %s4726_s5 = inlined_call_operand.vmem [shape: f32[9,1,1,256], index: 5, kind: input, shape index: {}]   ;;  %s4727_s6 = inlined_call_operand.hbm [shape: f32[2,4,256], index: 6, kind: output, shape index: {}]  }
   0x1   :  { %v24_v0 = vld [vmem:[%s4721_s0] sm:$0xff]  ;;  %v25_v2 = vld [vmem:[%s4721_s0 + $0x8] sm:$0xff]  ;;  %56 = vst [vmem:[#allocation2] sm:$0xff] %v3947_v10  ;;  %59 = vst [vmem:[#allocation2 + $0xc] sm:$0xff] %v3947_v10  ;;  %353 = vmatprep.mubr.f32.mxu0 %v3947_v10  ;;  %1163 = vmatprep.mubr.f32.mxu1 %v3947_v10 }
   0x2   :  { %63 = vrot.lane.b32.xlu0 %v24_v0, %s3946_s23  ;;  %v4015_v3 = vshrl.u32 %v87_v1, 7  ;;  %v48_v4 = vld [vmem:[%s4726_s5 + $0x2] sm:$0x3]  ;;  %v50_v5 = vld [vmem:[%s4726_s5 + $0x6] sm:$0x3] }
   0x3   :  { %v49_v6 = vld [vmem:[%s4726_s5 + $0x4] sm:$0x3]  ;;  %v52_v9 = vld [vmem:[%s4726_s5 + $0xa] sm:$0x3]  ;;  %v51_v15 = vld [vmem:[%s4726_s5 + $0x8] sm:$0x3] }
   0x4   :  { %v89_v7 = vsub.s32 0, %v4015_v3  ;;  %v93_v8 = vsub.s32 1, %v4015_v3  ;;  %58 = vst.msk [vmem:[#allocation2 + $0x8] sm:$0xf] %vm57_vm0, %v3947_v10  ;;  %60 = vst.msk [vmem:[#allocation2 + $0x14] sm:$0xf] %vm57_vm0, %v3947_v10 }
   0x5   :  { %v54_v20 = vld [vmem:[%s4726_s5 + $0xe] sm:$0x3] }
   0x6   :  { %65 = vrot.lane.b32.xlu0 %v25_v2, %s3946_s23  ;;  %v105_v11 = vrot.slane %v48_v4, %v89_v7  ;;  %v109_v12 = vrot.slane %v48_v4, %v93_v8  ;;  %v147_v13 = vrot.slane %v50_v5, %v89_v7  ;;  %v151_v14 = vrot.slane %v50_v5, %v93_v8 }
   0x7   :  { %v126_v16 = vrot.slane %v49_v6, %v89_v7  ;;  %v130_v17 = vrot.slane %v49_v6, %v93_v8  ;;  %v188_v18 = vrot.slane %v52_v9, %v89_v7  ;;  %v192_v19 = vrot.slane %v52_v9, %v93_v8 }
   0x8   :  { %11 = vsyncpa [#allocation4], 0  ;;  %v110_v21 = vcombine.low %v105_v11, %v109_v12  ;;  %v152_v22 = vcombine.low %v147_v13, %v151_v14  ;;  %v168_v24 = vrot.slane %v51_v15, %v89_v7  ;;  %v172_v25 = vrot.slane %v51_v15, %v93_v8  ;;  %s3948_s14 = smov 1   ;;  %s3949_s15 = smov 16   ;;  %v53_v29 = vld [vmem:[%s4726_s5 + $0xc] sm:$0x3] }
   0x9   :  { %v131_v23 = vcombine.low %v126_v16, %v130_v17  ;;  %v193_v26 = vcombine.low %v188_v18, %v192_v19  ;;  %v230_v27 = vrot.slane %v54_v20, %v89_v7  ;;  %v234_v28 = vrot.slane %v54_v20, %v93_v8  ;;  %v47_v30 = vld [vmem:[%s4726_s5] sm:$0x3]  ;;  %s3950_s20 = smov 2   ;;  %s3951_s21 = smov 18   ;;  %v55_v37 = vld [vmem:[%s4726_s5 + $0x10] sm:$0x3] }
   0xa   :  { %111 = vrot.lane.b32.xlu1 %v110_v21, %s3948_s14  ;;  %153 = vrot.lane.b32.xlu0 %v152_v22, %s3949_s15  ;;  %v173_v31 = vcombine.low %v168_v24, %v172_v25  ;;  %v209_v32 = vrot.slane %v53_v29, %v89_v7  ;;  %v213_v33 = vrot.slane %v53_v29, %v93_v8  ;;  %s3952_s25 = smov 33   ;;  %s3953_s26 = smov 32   ;;  %vm76_vm1 = vcmask 1043592  }
   0xb   :  { %v235_v34 = vcombine.low %v230_v27, %v234_v28  ;;  %v90_v35 = vrot.slane %v47_v30, %v89_v7  ;;  %v94_v36 = vrot.slane %v47_v30, %v93_v8  ;;  %v251_v40 = vrot.slane %v55_v37, %v89_v7  ;;  %s3954_s27 = smov 34   ;;  %s3955_s5 = smov 127  }
   0xc   :  { %v214_v39 = vcombine.low %v209_v32, %v213_v33  ;;  %v255_v41 = vrot.slane %v55_v37, %v93_v8  ;;  %vm77_vm2 = vcmask 1047556   ;;  %vm69_vm3 = vcmask 138240   ;;  %s3956_s28 = smov 126   ;;  %s3957_s29 = smov 112  }
   0xd   :  { %v4053_v38 = vcombine.low %v90_v35, %v94_v36  ;;  %vm80_vm4 = vcmask 134144   ;;  %vm4056_vm5 = vmor %vm77_vm2, %vm76_vm1  ;;  %vm114_vm6 = vcmask 7168   ;;  %vm135_vm7 = vcmask 15360   ;;  %s3958_s30 = smov 111   ;;  %s3959_s7 = smov 110  }
   0xe   :  { %132 = vrot.lane.b32.xlu1 %v131_v23, %s3950_s20  ;;  %194 = vrot.lane.b32.xlu0 %v193_v26, %s3951_s21  ;;  %v256_v42 = vcombine.low %v251_v40, %v255_v41  ;;  %vm156_vm8 = vcmask 130048   ;;  %vm197_vm9 = vcmask 146432   ;;  %vm218_vm10 = vcmask 261120   ;;  %s3960_s8 = smov 96   ;;  %s3961_s9 = smov 95  }
   0xf   :  { %vm239_vm11 = vcmask 269312   ;;  %vm260_vm12 = vcmask 277504   ;;  %s3963_s10 = smov 94   ;;  %vm277_vm13 = vcmask 1039360   ;;  %vm284_vm14 = vcmask 1043456  }
  0x10   :  { %vm280_vm15 = vcmask 31744   ;;  %vm449_vm0 = vcmask 1031168   ;;  %vm541_vm1 = vcmask 916480   ;;  %vm633_vm2 = vcmask 908288  }
  0x12   :  { %174 = vrot.lane.b32.xlu1 %v173_v31, %s3946_s23  ;;  %236 = vrot.lane.b32.xlu0 %v235_v34, %s3952_s25 }
  0x16   :  { %215 = vrot.lane.b32.xlu1 %v214_v39, %s3953_s26 }
  0x1a   :  { %257 = vrot.lane.b32.xlu1 %v256_v42, %s3954_s27 }
  0x74   :  { %v64_v43 = vpop.permute.xlu0 %63 }
  0x75   :  { %v67_v45 = vrot.slane %v64_v43, 4 }
  0x77   :  { %v70_v46 = vsel %vm69_vm3, %v67_v45, %v64_v43  ;;  %81 = vst.msk [vmem:[#allocation2 + $0x8] sm:$0xf] %vm80_vm4, %v67_v45 }
  0x78   :  { %79 = vst.msk [vmem:[#allocation2] sm:$0xff] %vm4056_vm5, %v70_v46  ;;  %v66_v47 = vpop.permute.xlu0 %65 }
  0x79   :  { %v68_v48 = vrot.slane %v66_v47, 4 }
  0x7b   :  { %v71_v49 = vsel %vm69_vm3, %v68_v48, %v66_v47  ;;  %83 = vst.msk [vmem:[#allocation2 + $0x14] sm:$0xf] %vm80_vm4, %v68_v48 }
  0x7c   :  { %82 = vst.msk [vmem:[#allocation2 + $0xc] sm:$0xff] %vm4056_vm5, %v71_v49  ;;  %v112_v50 = vpop.permute.xlu1 %111  ;;  %v154_v53 = vpop.permute.xlu0 %153 }
  0x7d   :  { %v4068_v51 = vrot.slane %v112_v50, 4  ;;  %v4081_v59 = vrot.slane %v154_v53, 4 }
  0x7e   :  { %v4070_v52 = vld [vmem:[#allocation2 + $0x8] sm:$0xf] }
  0x7f   :  { %v4072_v54 = vld [vmem:[#allocation2] sm:$0xff]  ;;  %v4075_v55 = vsel %vm114_vm6, %v4068_v51, %v112_v50  ;;  %v119_v56 = vmul.f32 %v4068_v51, %v4070_v52  ;;  %v4097_v2 = vsel %vm156_vm8, %v4081_v59, %v154_v53  ;;  %v161_v14 = vmul.f32 %v4081_v59, %v4070_v52 }
  0x80   :  { %v133_v57 = vpop.permute.xlu1 %132  ;;  %v118_v58 = vmul.f32 %v4075_v55, %v4072_v54  ;;  %v195_v5 = vpop.permute.xlu0 %194  ;;  %v160_v7 = vmul.f32 %v4097_v2, %v4072_v54  ;;  %vm725_vm6 = vcmask 900096   ;;  %vm909_vm8 = vcmask 777216  }
  0x81   :  { %v4083_v60 = vrot.slane %v133_v57, 4  ;;  %275 = vrot.lane.b32.xlu1 %v119_v56, %s3955_s5  ;;  %v4107_v8 = vrot.slane %v195_v5, 4 }
  0x82   :  { %v4086_v61 = vld [vmem:[#allocation2 + $0x14] sm:$0xf]  ;;  %271 = vrot.lane.b32.xlu0 %v118_v58, %s3955_s5  ;;  %v270_v19 = vcombine.high %v118_v58, %v118_v58  ;;  %v534_v36 = vcombine.high %v160_v7, %v160_v7 }
  0x83   :  { %v121_v62 = vmul.f32 %v4068_v51, %v4086_v61  ;;  %v4092_v63 = vsel %vm135_vm7, %v4083_v60, %v133_v57  ;;  %v140_v6 = vmul.f32 %v4083_v60, %v4070_v52  ;;  %v142_v11 = vmul.f32 %v4083_v60, %v4086_v61  ;;  %v4129_v16 = vld [vmem:[#allocation2 + $0xc] sm:$0xff] }
  0x84   :  { %v175_v0 = vpop.permute.xlu1 %174  ;;  %v139_v1 = vmul.f32 %v4092_v63, %v4072_v54  ;;  %v4120_v13 = vsel %vm197_vm9, %v4107_v8, %v195_v5  ;;  %v163_v18 = vmul.f32 %v4081_v59, %v4086_v61  ;;  %v120_v20 = vmul.f32 %v4075_v55, %v4129_v16  ;;  %v237_v22 = vpop.permute.xlu0 %236 }
  0x85   :  { %v4099_v4 = vrot.slane %v175_v0, 4  ;;  %1091 = vrot.lane.b32.xlu1 %v121_v62, %s3955_s5  ;;  %v201_v15 = vmul.f32 %v4120_v13, %v4072_v54  ;;  %v4142_v25 = vrot.slane %v237_v22, 4  ;;  %v202_v31 = vmul.f32 %v4107_v8, %v4070_v52 }
  0x86   :  { %443 = vrot.lane.b32.xlu0 %v139_v1, %s3956_s28  ;;  %v1086_v24 = vcombine.high %v120_v20, %v120_v20  ;;  %v442_v32 = vcombine.high %v139_v1, %v139_v1  ;;  %v141_v33 = vmul.f32 %v4092_v63, %v4129_v16  ;;  %v204_v34 = vmul.f32 %v4107_v8, %v4086_v61 }
  0x87   :  { %v4111_v9 = vsel %vm69_vm3, %v4099_v4, %v175_v0  ;;  %v181_v23 = vmul.f32 %v4099_v4, %v4070_v52  ;;  %v4152_v28 = vsel %vm239_vm11, %v4142_v25, %v237_v22  ;;  %v183_v29 = vmul.f32 %v4099_v4, %v4086_v61 }
  0x88   :  { %v180_v12 = vmul.f32 %v4111_v9, %v4072_v54  ;;  %v216_v17 = vpop.permute.xlu1 %215  ;;  %v243_v30 = vmul.f32 %v4152_v28, %v4072_v54  ;;  %v1249_v35 = vcombine.high %v141_v33, %v141_v33  ;;  %v162_v37 = vmul.f32 %v4097_v2, %v4129_v16 }
  0x89   :  { %447 = vrot.lane.b32.xlu1 %v140_v6, %s3956_s28  ;;  %v4136_v21 = vrot.slane %v216_v17, 4  ;;  %v182_v42 = vmul.f32 %v4111_v9, %v4129_v16  ;;  %v718_v46 = vcombine.high %v201_v15, %v201_v15  ;;  %v203_v47 = vmul.f32 %v4120_v13, %v4129_v16 }
  0x8a   :  { %535 = vrot.lane.b32.xlu0 %v160_v7, %s3957_s29  ;;  %v1337_v40 = vcombine.high %v162_v37, %v162_v37  ;;  %v626_v41 = vcombine.high %v180_v12, %v180_v12  ;;  %v244_v56 = vmul.f32 %v4142_v25, %v4070_v52  ;;  %v246_v62 = vmul.f32 %v4142_v25, %v4086_v61 }
  0x8b   :  { %v4145_v26 = vsel %vm218_vm10, %v4136_v21, %v216_v17  ;;  %v223_v39 = vmul.f32 %v4136_v21, %v4070_v52  ;;  %v225_v43 = vmul.f32 %v4136_v21, %v4086_v61  ;;  %v1425_v45 = vcombine.high %v182_v42, %v182_v42 }
  0x8c   :  { %v222_v27 = vmul.f32 %v4145_v26, %v4072_v54  ;;  %v1513_v48 = vcombine.high %v203_v47, %v203_v47  ;;  %v224_v49 = vmul.f32 %v4145_v26, %v4129_v16  ;;  %v258_v53 = vpop.permute.xlu1 %257  ;;  %v902_v0 = vcombine.high %v243_v30, %v243_v30 }
  0x8d   :  { %1254 = vrot.lane.b32.xlu1 %v142_v11, %s3956_s28  ;;  %v4200_v58 = vrot.slane %v258_v53, 4  ;;  %v245_v1 = vmul.f32 %v4152_v28, %v4129_v16  ;;  %vm817_vm7 = vcmask 785408   ;;  %vm1001_vm9 = vcmask 769024  }
  0x8e   :  { %627 = vrot.lane.b32.xlu0 %v180_v12, %s3958_s30  ;;  %v810_v50 = vcombine.high %v222_v27, %v222_v27  ;;  %v1601_v57 = vcombine.high %v224_v49, %v224_v49 }
  0x8f   :  { %v4209_v5 = vsel %vm260_vm12, %v4200_v58, %v258_v53  ;;  %v1689_v6 = vcombine.high %v245_v1, %v245_v1  ;;  %v265_v11 = vmul.f32 %v4200_v58, %v4070_v52  ;;  %v267_v17 = vmul.f32 %v4200_v58, %v4086_v61  ;;  %v4232_v52 = vld [vmem:[%s4725_s4] sm:$0xf] }
  0x90   :  { %v264_v7 = vmul.f32 %v4209_v5, %v4072_v54 }
  0x91   :  { %539 = vrot.lane.b32.xlu1 %v161_v14, %s3957_s29  ;;  %v266_v14 = vmul.f32 %v4209_v5, %v4129_v16 }
  0x92   :  { %719 = vrot.lane.b32.xlu0 %v201_v15, %s3959_s7  ;;  %v994_v12 = vcombine.high %v264_v7, %v264_v7  ;;  %v3962_v15 = vmov 0  }
  0x93   :  { %3909 = vset.pattern.permute.xlu0 %v3962_v15 }
  0x95   :  { %1342 = vrot.lane.b32.xlu1 %v163_v18, %s3957_s29  ;;  %v1777_v18 = vcombine.high %v266_v14, %v266_v14 }
  0x96   :  { %273 = vrot.lane.b32.xlu0 %v270_v19, %s3955_s5 }
  0x99   :  { %631 = vrot.lane.b32.xlu1 %v181_v23, %s3958_s30 }
  0x9a   :  { %1089 = vrot.lane.b32.xlu0 %v1086_v24, %s3955_s5 }
  0x9d   :  { %1087 = vrot.lane.b32.xlu1 %v120_v20, %s3955_s5 }
  0x9e   :  { %811 = vrot.lane.b32.xlu0 %v222_v27, %s3960_s8 }
  0xa1   :  { %1430 = vrot.lane.b32.xlu1 %v183_v29, %s3958_s30 }
  0xa2   :  { %903 = vrot.lane.b32.xlu0 %v243_v30, %s3961_s9 }
  0xa5   :  { %723 = vrot.lane.b32.xlu1 %v202_v31, %s3959_s7 }
  0xa6   :  { %445 = vrot.lane.b32.xlu0 %v442_v32, %s3956_s28  ;;  %v97_v32 = vmul.f32 %v4053_v38, %v4072_v54 }
  0xa9   :  { %1518 = vrot.lane.b32.xlu1 %v204_v34, %s3959_s7 }
  0xaa   :  { %1252 = vrot.lane.b32.xlu0 %v1249_v35, %s3956_s28 }
  0xad   :  { %1250 = vrot.lane.b32.xlu1 %v141_v33, %s3956_s28 }
  0xae   :  { %537 = vrot.lane.b32.xlu0 %v534_v36, %s3957_s29 }
  0xb1   :  { %815 = vrot.lane.b32.xlu1 %v223_v39, %s3960_s8  ;;  %v361_v39 = vcombine.high %v97_v32, %v97_v32 }
  0xb2   :  { %1340 = vrot.lane.b32.xlu0 %v1337_v40, %s3957_s29 }
  0xb5   :  { %1338 = vrot.lane.b32.xlu1 %v162_v37, %s3957_s29  ;;  %v29_v37 = vld [vmem:[%s4723_s2 + $0x4] sm:$0xf] }
  0xb6   :  { %629 = vrot.lane.b32.xlu0 %v626_v41, %s3958_s30  ;;  %v98_v41 = vmul.f32 %v4053_v38, %v4129_v16  ;;  %v28_v16 = vld [vmem:[%s4723_s2] sm:$0xf] }
  0xb9   :  { %1606 = vrot.lane.b32.xlu1 %v225_v43, %s3960_s8 }
  0xba   :  { %1428 = vrot.lane.b32.xlu0 %v1425_v45, %s3958_s30 }
  0xbd   :  { %1426 = vrot.lane.b32.xlu1 %v182_v42, %s3958_s30 }
  0xbe   :  { %721 = vrot.lane.b32.xlu0 %v718_v46, %s3959_s7 }
  0xc1   :  { %1514 = vrot.lane.b32.xlu1 %v203_v47, %s3959_s7  ;;  %v1171_v47 = vcombine.high %v98_v41, %v98_v41 }
  0xc2   :  { %1516 = vrot.lane.b32.xlu0 %v1513_v48, %s3959_s7 }
  0xc5   :  { %1602 = vrot.lane.b32.xlu1 %v224_v49, %s3960_s8 }
  0xc6   :  { %813 = vrot.lane.b32.xlu0 %v810_v50, %s3960_s8 }
  0xc9   :  { %907 = vrot.lane.b32.xlu1 %v244_v56, %s3961_s9 }
  0xca   :  { %1604 = vrot.lane.b32.xlu0 %v1601_v57, %s3960_s8 }
  0xcd   :  { %1694 = vrot.lane.b32.xlu1 %v246_v62, %s3961_s9  ;;  %v30_v62 = vld [vmem:[%s4723_s2 + $0x8] sm:$0xf] }
  0xce   :  { %905 = vrot.lane.b32.xlu0 %v902_v0, %s3961_s9 }
  0xd1   :  { %1690 = vrot.lane.b32.xlu1 %v245_v1, %s3961_s9 }
  0xd2   :  { %1692 = vrot.lane.b32.xlu0 %v1689_v6, %s3961_s9 }
  0xd5   :  { %999 = vrot.lane.b32.xlu1 %v265_v11, %s3963_s10 }
  0xd6   :  { %997 = vrot.lane.b32.xlu0 %v994_v12, %s3963_s10 }
  0xd9   :  { %1782 = vrot.lane.b32.xlu1 %v267_v17, %s3963_s10  ;;  %v31_v17 = vld [vmem:[%s4723_s2 + $0xc] sm:$0xf] }
  0xda   :  { %1780 = vrot.lane.b32.xlu0 %v1777_v18, %s3963_s10 }
  0xdd   :  { %1778 = vrot.lane.b32.xlu1 %v266_v14, %s3963_s10 }
  0xde   :  { %995 = vrot.lane.b32.xlu0 %v264_v7, %s3963_s10 }
  0xe2   :  { %1865 = vperm.xlu0 %3909, %v4232_v52  }
  0xf3   :  { %v276_v19 = vpop.permute.xlu1 %275 }
  0xf4   :  { %v272_v20 = vpop.permute.xlu0 %271 }
  0xf7   :  { %v1092_v22 = vpop.permute.xlu1 %1091 }
  0xf8   :  { %v444_v61 = vpop.permute.xlu0 %443 }
  0xfb   :  { %v448_v23 = vpop.permute.xlu1 %447 }
  0xfc   :  { %v536_v24 = vpop.permute.xlu0 %535 }
  0xff   :  { %v1255_v27 = vpop.permute.xlu1 %1254 }
 0x100   :  { %v4235_v29 = vpop.permute.xlu0 %627 }
 0x103   :  { %v540_v30 = vpop.permute.xlu1 %539 }
 0x104   :  { %v4237_v31 = vpop.permute.xlu0 %719 }
 0x107   :  { %v4241_v33 = vpop.permute.xlu1 %1342 }
 0x108   :  { %v274_v34 = vpop.permute.xlu0 %273 }
 0x109   :  { %v279_v35 = vsel %vm277_vm13, %v274_v34, %v276_v19  ;;  %v278_v36 = vsel %vm277_vm13, %v272_v20, %v274_v34 }
 0x10a   :  { %3710 = vmatprep.subr.msk.mxu0 %vm284_vm14, %v279_v35 }
 0x10b   :  { %v4249_v40 = vpop.permute.xlu1 %631  ;;  %3711 = vmatpush1.msk.msra.mxu0 %vm284_vm14, %v278_v36 }
 0x10c   :  { %3713 = vmatprep.subr.msk.mxu0 %vm284_vm14, %v361_v39  ;;  %v1090_v54 = vpop.permute.xlu0 %1089  ;;  %3712 = vmatmul.mubr.msk.f32.vlgmr.msra.gmra.mrb[0].mxu0 %vm280_vm15, %v29_v37 }
 0x10d   :  { %3714 = vmatpush1.msk.msra.mxu0 %vm284_vm14, %v97_v32  ;;  %v1094_v42 = vsel %vm277_vm13, %v1090_v54, %v1092_v22  ;;  %433 = vmatprep.mubr.f32.mxu0 %v3947_v10 }
 0x10e   :  { %3737 = vmatprep.subr.msk.mxu1 %vm284_vm14, %v1094_v42 }
 0x10f   :  { %v1088_v43 = vpop.permute.xlu1 %1087 }
 0x110   :  { %v4260_v45 = vpop.permute.xlu0 %811  ;;  %v1093_v46 = vsel %vm277_vm13, %v1088_v43, %v1090_v54 }
 0x111   :  { %3738 = vmatpush1.msk.msra.mxu1 %vm284_vm14, %v1093_v46 }
 0x112   :  { %3739 = vmatmul.mubr.msk.f32.vlgmr.msra.gmra.mrb[0].mxu1 %vm280_vm15, %v29_v37  ;;  %3740 = vmatprep.subr.msk.mxu1 %vm284_vm14, %v1171_v47 }
 0x113   :  { %v1431_v48 = vpop.permute.xlu1 %1430  ;;  %3741 = vmatpush1.msk.msra.mxu1 %vm284_vm14, %v98_v41  ;;  %1240 = vmatprep.mubr.f32.mxu1 %v3947_v10 }
 0x114   :  { %v4271_v49 = vpop.permute.xlu0 %903  ;;  %3715 = vmatmul.mubr.msk.f32.vlgmr.msra.gmra.mrb[0].mxu0 %vm280_vm15, %v28_v16 }
 0x115   :  { %523 = vmatprep.mubr.f32.mxu0 %v3947_v10 }
 0x117   :  { %v724_v50 = vpop.permute.xlu1 %723 }
 0x118   :  { %v446_v53 = vpop.permute.xlu0 %445 }
 0x119   :  { %v450_v56 = vsel %vm449_vm0, %v444_v61, %v446_v53  ;;  %v451_v57 = vsel %vm449_vm0, %v446_v53, %v448_v23 }
 0x11a   :  { %3716 = vmatprep.subr.msk.mxu0 %vm284_vm14, %v451_v57  ;;  %3742 = vmatmul.mubr.msk.f32.vlgmr.msra.gmra.mrb[0].mxu1 %vm280_vm15, %v28_v16 }
 0x11b   :  { %v1519_v0 = vpop.permute.xlu1 %1518  ;;  %3717 = vmatpush1.msk.msra.mxu0 %vm284_vm14, %v450_v56  ;;  %1326 = vmatprep.mubr.f32.mxu1 %v3947_v10 }
 0x11c   :  { %v1253_v1 = vpop.permute.xlu0 %1252  ;;  %3718 = vmatmul.mubr.msk.f32.vlgmr.msra.gmra.mrb[0].mxu0 %vm280_vm15, %v30_v62 }
 0x11d   :  { %v1257_v6 = vsel %vm449_vm0, %v1253_v1, %v1255_v27  ;;  %615 = vmatprep.mubr.f32.mxu0 %v3947_v10 }
 0x11e   :  { %3743 = vmatprep.subr.msk.mxu1 %vm284_vm14, %v1257_v6  ;;  %v35_v6 = vld [vmem:[%s4723_s2 + $0x1c] sm:$0xf] }
 0x11f   :  { %v1251_v7 = vpop.permute.xlu1 %1250 }
 0x120   :  { %v1256_v11 = vsel %vm449_vm0, %v1251_v7, %v1253_v1  ;;  %v538_v12 = vpop.permute.xlu0 %537 }
 0x121   :  { %v542_v14 = vsel %vm541_vm1, %v536_v24, %v538_v12  ;;  %v543_v15 = vsel %vm541_vm1, %v538_v12, %v540_v30  ;;  %3744 = vmatpush1.msk.msra.mxu1 %vm284_vm14, %v1256_v11  ;;  %v32_v30 = vld [vmem:[%s4723_s2 + $0x10] sm:$0xf] }
 0x122   :  { %3719 = vmatprep.subr.msk.mxu0 %vm284_vm14, %v543_v15  ;;  %3745 = vmatmul.mubr.msk.f32.vlgmr.msra.gmra.mrb[0].mxu1 %vm280_vm15, %v30_v62 }
 0x123   :  { %v816_v18 = vpop.permute.xlu1 %815  ;;  %3720 = vmatpush1.msk.msra.mxu0 %vm284_vm14, %v542_v14  ;;  %1414 = vmatprep.mubr.f32.mxu1 %v3947_v10 }
 0x124   :  { %v1341_v19 = vpop.permute.xlu0 %1340  ;;  %3721 = vmatmul.mubr.msk.f32.vlgmr.msra.gmra.mrb[0].mxu0 %vm280_vm15, %v31_v17 }
 0x125   :  { %v1345_v20 = vsel %vm541_vm1, %v1341_v19, %v4241_v33  ;;  %707 = vmatprep.mubr.f32.mxu0 %v3947_v10 }
 0x126   :  { %3746 = vmatprep.subr.msk.mxu1 %vm284_vm14, %v1345_v20 }
 0x127   :  { %v1339_v22 = vpop.permute.xlu1 %1338 }
 0x128   :  { %v1344_v61 = vsel %vm541_vm1, %v1339_v22, %v1341_v19  ;;  %v630_v23 = vpop.permute.xlu0 %629 }
 0x129   :  { %v634_v24 = vsel %vm633_vm2, %v4235_v29, %v630_v23  ;;  %v635_v27 = vsel %vm633_vm2, %v630_v23, %v4249_v40  ;;  %3747 = vmatpush1.msk.msra.mxu1 %vm284_vm14, %v1344_v61  ;;  %v33_v40 = vld [vmem:[%s4723_s2 + $0x14] sm:$0xf]  ;;  %v36_v61 = vld [vmem:[%s4723_s2 + $0x20] sm:$0xf] }
 0x12a   :  { %3722 = vmatprep.subr.msk.mxu0 %vm284_vm14, %v635_v27  ;;  %3748 = vmatmul.mubr.msk.f32.vlgmr.msra.gmra.mrb[0].mxu1 %vm280_vm15, %v31_v17 }
 0x12b   :  { %v1607_v32 = vpop.permute.xlu1 %1606  ;;  %3723 = vmatpush1.msk.msra.mxu0 %vm284_vm14, %v634_v24  ;;  %1502 = vmatprep.mubr.f32.mxu1 %v3947_v10 }
 0x12c   :  { %v1429_v33 = vpop.permute.xlu0 %1428  ;;  %3724 = vmatmul.mubr.msk.f32.vlgmr.msra.gmra.mrb[0].mxu0 %vm280_vm15, %v32_v30 }
 0x12d   :  { %v1433_v29 = vsel %vm633_vm2, %v1429_v33, %v1431_v48  ;;  %799 = vmatprep.mubr.f32.mxu0 %v3947_v10  ;;  %v34_v48 = vld [vmem:[%s4723_s2 + $0x18] sm:$0xf] }
 0x12e   :  { %3749 = vmatprep.subr.msk.mxu1 %vm284_vm14, %v1433_v29 }
 0x12f   :  { %v1427_v34 = vpop.permute.xlu1 %1426 }
 0x130   :  { %v1432_v35 = vsel %vm633_vm2, %v1427_v34, %v1429_v33  ;;  %v722_v36 = vpop.permute.xlu0 %721 }
 0x131   :  { %v726_v37 = vsel %vm725_vm6, %v4237_v31, %v722_v36  ;;  %v727_v39 = vsel %vm725_vm6, %v722_v36, %v724_v50  ;;  %3750 = vmatpush1.msk.msra.mxu1 %vm284_vm14, %v1432_v35 }
 0x132   :  { %3725 = vmatprep.subr.msk.mxu0 %vm284_vm14, %v727_v39  ;;  %3751 = vmatmul.mubr.msk.f32.vlgmr.msra.gmra.mrb[0].mxu1 %vm280_vm15, %v32_v30  ;;  %v27_v39 = vld [vmem:[%s4722_s1 + $0x8] sm:$0xff] }
 0x133   :  { %v1515_v54 = vpop.permute.xlu1 %1514  ;;  %3726 = vmatpush1.msk.msra.mxu0 %vm284_vm14, %v726_v37  ;;  %1590 = vmatprep.mubr.f32.mxu1 %v3947_v10 }
 0x134   :  { %v1517_v41 = vpop.permute.xlu0 %1516  ;;  %3727 = vmatmul.mubr.msk.f32.vlgmr.msra.gmra.mrb[0].mxu0 %vm280_vm15, %v33_v40 }
 0x135   :  { %v1520_v31 = vsel %vm725_vm6, %v1515_v54, %v1517_v41  ;;  %v1521_v42 = vsel %vm725_vm6, %v1517_v41, %v1519_v0  ;;  %891 = vmatprep.mubr.f32.mxu0 %v3947_v10  ;;  %v26_v41 = vld [vmem:[%s4722_s1] sm:$0xff] }
 0x136   :  { %3752 = vmatprep.subr.msk.mxu1 %vm284_vm14, %v1521_v42 }
 0x137   :  { %v1603_v43 = vpop.permute.xlu1 %1602  ;;  %3753 = vmatpush1.msk.msra.mxu1 %vm284_vm14, %v1520_v31 }
 0x138   :  { %v814_v46 = vpop.permute.xlu0 %813 }
 0x139   :  { %v818_v47 = vsel %vm817_vm7, %v4260_v45, %v814_v46  ;;  %v819_v16 = vsel %vm817_vm7, %v814_v46, %v816_v18 }
 0x13a   :  { %3728 = vmatprep.subr.msk.mxu0 %vm284_vm14, %v819_v16  ;;  %3754 = vmatmul.mubr.msk.f32.vlgmr.msra.gmra.mrb[0].mxu1 %vm280_vm15, %v33_v40 }
 0x13b   :  { %v908_v50 = vpop.permute.xlu1 %907  ;;  %3729 = vmatpush1.msk.msra.mxu0 %vm284_vm14, %v818_v47  ;;  %1678 = vmatprep.mubr.f32.mxu1 %v3947_v10 }
 0x13c   :  { %v1605_v53 = vpop.permute.xlu0 %1604  ;;  %3730 = vmatmul.mubr.msk.f32.vlgmr.msra.gmra.mrb[0].mxu0 %vm280_vm15, %v34_v48 }
 0x13d   :  { %v1608_v45 = vsel %vm817_vm7, %v1603_v43, %v1605_v53  ;;  %v1609_v56 = vsel %vm817_vm7, %v1605_v53, %v1607_v32  ;;  %983 = vmatprep.mubr.f32.mxu0 %v3947_v10 }
 0x13e   :  { %3755 = vmatprep.subr.msk.mxu1 %vm284_vm14, %v1609_v56 }
 0x13f   :  { %v1695_v57 = vpop.permute.xlu1 %1694  ;;  %3756 = vmatpush1.msk.msra.mxu1 %vm284_vm14, %v1608_v45 }
 0x140   :  { %v906_v62 = vpop.permute.xlu0 %905 }
 0x141   :  { %v910_v0 = vsel %vm909_vm8, %v4271_v49, %v906_v62  ;;  %v911_v1 = vsel %vm909_vm8, %v906_v62, %v908_v50 }
 0x142   :  { %3731 = vmatprep.subr.msk.mxu0 %vm284_vm14, %v911_v1  ;;  %3757 = vmatmul.mubr.msk.f32.vlgmr.msra.gmra.mrb[0].mxu1 %vm280_vm15, %v34_v48 }
 0x143   :  { %v1691_v7 = vpop.permute.xlu1 %1690  ;;  %3732 = vmatpush1.msk.msra.mxu0 %vm284_vm14, %v910_v0  ;;  %1766 = vmatprep.mubr.f32.mxu1 %v3947_v10 }
 0x144   :  { %v1693_v11 = vpop.permute.xlu0 %1692  ;;  %3733 = vmatmul.mubr.msk.f32.vlgmr.msra.gmra.mrb[0].mxu0 %vm280_vm15, %v35_v6 }
 0x145   :  { %v1696_v49 = vsel %vm909_vm8, %v1691_v7, %v1693_v11  ;;  %v1697_v12 = vsel %vm909_vm8, %v1693_v11, %v1695_v57  ;;  %1075 = vmatprep.mubr.f32.mxu0 %v3947_v10 }
 0x146   :  { %3758 = vmatprep.subr.msk.mxu1 %vm284_vm14, %v1697_v12 }
 0x147   :  { %v1000_v14 = vpop.permute.xlu1 %999  ;;  %3759 = vmatpush1.msk.msra.mxu1 %vm284_vm14, %v1696_v49 }
 0x148   :  { %v998_v15 = vpop.permute.xlu0 %997 }
 0x149   :  { %v1003_v17 = vsel %vm1001_vm9, %v998_v15, %v1000_v14 }
 0x14a   :  { %3734 = vmatprep.subr.msk.mxu0 %vm284_vm14, %v1003_v17  ;;  %3760 = vmatmul.mubr.msk.f32.vlgmr.msra.gmra.mrb[0].mxu1 %vm280_vm15, %v35_v6  ;;  %v3965_v17 = vmov 3  }
 0x14b   :  { %v1783_v18 = vpop.permute.xlu1 %1782  ;;  %1854 = vmatprep.mubr.f32.mxu1 %v3947_v10  ;;  %3911 = vset.pattern.permute.xlu0 %v3965_v17 }
 0x14c   :  { %v1781_v19 = vpop.permute.xlu0 %1780 }
 0x14d   :  { %v1785_v20 = vsel %vm1001_vm9, %v1781_v19, %v1783_v18 }
 0x14e   :  { %3761 = vmatprep.subr.msk.mxu1 %vm284_vm14, %v1785_v20 }
 0x14f   :  { %v1779_v22 = vpop.permute.xlu1 %1778 }
 0x150   :  { %v1784_v23 = vsel %vm1001_vm9, %v1779_v22, %v1781_v19  ;;  %v996_v24 = vpop.permute.xlu0 %995 }
 0x151   :  { %v1002_v27 = vsel %vm1001_vm9, %v996_v24, %v998_v15  ;;  %3762 = vmatpush1.msk.msra.mxu1 %vm284_vm14, %v1784_v23  ;;  %v3964_v15 = vmov 2  }
 0x152   :  { %3735 = vmatpush1.msk.msra.mxu0 %vm284_vm14, %v1002_v27  ;;  %3763 = vmatmul.mubr.msk.f32.vlgmr.msra.gmra.mrb[0].mxu1 %vm280_vm15, %v36_v61 }
 0x153   :  { %3736 = vmatmul.mubr.msk.f32.vlgmr.msra.gmra.mrb[0].mxu0 %vm280_vm15, %v36_v61  ;;  %2911 = vmatprep.mubr.f32.mxu1 %v3947_v10 }
 0x154   :  { %2108 = vmatprep.mubr.f32.mxu0 %v3947_v10  ;;  %3910 = vset.pattern.permute.xlu1 %v3964_v15 }
 0x161   :  { %v1866_v30 = vpop.permute.xlu0 %1865 }
 0x225   :  { %v1856_v32 = vpop.f32.mrb[0].mxu1 }
 0x226   :  { %v1077_v33 = vpop.f32.mrb[0].mxu0  ;;  %v1858_v29 = vpop.f32.mrb[1].mxu1  ;;  %v1870_v34 = vadd.f32 %v1866_v30, %v1856_v32 }
 0x227   :  { %v1868_v35 = vadd.f32 %v1866_v30, %v1077_v33  ;;  %v1871_v36 = vadd.f32 %v1866_v30, %v1858_v29  ;;  %v1079_v37 = vpop.f32.mrb[1].mxu0 }
 0x228   :  { %v1869_v40 = vadd.f32 %v1866_v30, %v1079_v37 }
 0x229   :  { %v1877_v54 = vcombine.low %v1870_v34, %v1871_v36 }
 0x22a   :  { %v1876_v31 = vcombine.low %v1868_v35, %v1869_v40 }
 0x22b   :  { %v1881_v42 = vsub.f32 %v27_v39, %v1877_v54  ;;  %v3966_v54 = vmov 839922192  }
 0x22c   :  { %v1880_v43 = vsub.f32 %v26_v41, %v1876_v31  ;;  %v1929_v41 = vunpack.c.l.s4 %v3966_v54 }
 0x22d   :  { %v1885_v46 = vcombine.high %v1881_v42, %v1881_v42  ;;  %v1902_v47 = vmul.f32 %v1881_v42, %v1881_v42  ;;  %v1893_v50 = vsel %vm284_vm14, %v1881_v42, 0.0 }
 0x22e   :  { %v1884_v16 = vcombine.high %v1880_v43, %v1880_v43  ;;  %v1901_v48 = vmul.f32 %v1880_v43, %v1880_v43  ;;  %v1888_v57 = vsel %vm284_vm14, %v1880_v43, 0.0  ;;  %v1930_v31 = vunpack.c.0.s8 %v1929_v41 }
 0x22f   :  { %v1894_v53 = vsel %vm284_vm14, %v1885_v46, 0.0  ;;  %v1906_v45 = vcombine.high %v1902_v47, %v1902_v47  ;;  %v1914_v11 = vsel %vm284_vm14, %v1902_v47, 0.0 }
 0x230   :  { %v1895_v56 = vadd.f32 %v1894_v53, %v1893_v50  ;;  %v1889_v62 = vsel %vm284_vm14, %v1884_v16, 0.0  ;;  %v1905_v0 = vcombine.high %v1901_v48, %v1901_v48  ;;  %v1909_v12 = vsel %vm284_vm14, %v1901_v48, 0.0 }
 0x231   :  { %v1890_v1 = vadd.f32 %v1889_v62, %v1888_v57  ;;  %v1915_v6 = vsel %vm284_vm14, %v1906_v45, 0.0  ;;  %v1933_v46 = vsub.s32 %v1930_v31, %v4015_v3 }
 0x232   :  { %1896 = vadd.xlane.f32.xlu0 %v1895_v56  ;;  %v1910_v7 = vsel %vm284_vm14, %v1905_v0, 0.0  ;;  %v1916_v49 = vadd.f32 %v1915_v6, %v1914_v11 }
 0x233   :  { %1891 = vadd.xlane.f32.xlu1 %v1890_v1  ;;  %v1911_v14 = vadd.f32 %v1910_v7, %v1909_v12 }
 0x236   :  { %1917 = vadd.xlane.f32.xlu0 %v1916_v49 }
 0x237   :  { %1912 = vadd.xlane.f32.xlu1 %v1911_v14 }
 0x24c   :  { %1956 = vperm.xlu0 %3911, %v4232_v52  }
 0x2bf   :  { %v1897_v18 = vpop.xlane.xlu0 %1896 }
 0x2c0   :  { %v1899_v19 = vsel %vm284_vm14, %v1897_v18, 0.0  ;;  %v1892_v20 = vpop.xlane.xlu1 %1891 }
 0x2c1   :  { %v1898_v22 = vsel %vm284_vm14, %v1892_v20, 0.0 }
 0x2c2   :  { %v1900_v61 = vadd.f32 %v1899_v19, %v1898_v22 }
 0x2c3   :  { %v1918_v23 = vpop.xlane.xlu0 %1917 }
 0x2c4   :  { %v1922_v24 = vmul.f32 0.001953125, %v1900_v61  ;;  %v1920_v27 = vsel %vm284_vm14, %v1918_v23, 0.0  ;;  %v1913_v30 = vpop.xlane.xlu1 %1912 }
 0x2c5   :  { %v1919_v32 = vsel %vm284_vm14, %v1913_v30, 0.0 }
 0x2c6   :  { %v1921_v33 = vadd.f32 %v1920_v27, %v1919_v32  ;;  %v1924_v29 = vmul.f32 %v1922_v24, %v1922_v24  ;;  %v1934_v47 = vrot.slane %v1922_v24, %v1933_v46 }
 0x2c8   :  { %v1923_v34 = vmul.f32 0.001953125, %v1921_v33  ;;  %v1936_v50 = vsub.f32 %v1880_v43, %v1934_v47  ;;  %v1937_v53 = vsub.f32 %v1881_v42, %v1934_v47 }
 0x2ca   :  { %v1925_v35 = vsub.f32 %v1923_v34, %v1924_v29 }
 0x2cb   :  { %v1957_v16 = vpop.permute.xlu0 %1956 }
 0x2cc   :  { %v1926_v36 = vmax.f32 %v1925_v35, 0.0  ;;  %v1964_v56 = vrot.slane %v1957_v16, %v1933_v46 }
 0x2ce   :  { %v1938_v37 = vadd.f32 1e-05, %v1926_v36 }
 0x2d0   :  { %3915 = vrsqrt.f32 %v1938_v37 }
 0x2da   :  { %v3916_v39 = vpop.eup %3915 }
 0x2db   :  { %v1940_v40 = vmul.f32 %v3916_v39, %v4232_v52 }
 0x2dd   :  { %1943 = vperm.xlu1 %3910, %v1940_v40  }
 0x35c   :  { %v1944_v48 = vpop.permute.xlu1 %1943 }
 0x35d   :  { %v1951_v45 = vrot.slane %v1944_v48, %v1933_v46 }
 0x35f   :  { %v1953_v57 = vmul.f32 %v1951_v45, %v1936_v50  ;;  %v1954_v62 = vmul.f32 %v1951_v45, %v1937_v53 }
 0x361   :  { %v1966_v0 = vadd.f32 %v1964_v56, %v1953_v57  ;;  %v1967_v1 = vadd.f32 %v1964_v56, %v1954_v62 }
 0x363   :  { %v1968_v6 = vmax.f32 %v1966_v0, 0.0  ;;  %v1969_v7 = vmax.f32 %v1967_v1, 0.0 }
 0x365   :  { %1972 = vrot.lane.b32.xlu1 %v1968_v6, %s3946_s23  ;;  %v3967_v6 = vmov 1  }
 0x366   :  { %3912 = vset.pattern.permute.xlu0 %v3967_v6 }
 0x369   :  { %1974 = vrot.lane.b32.xlu1 %v1969_v7, %s3946_s23 }
 0x3d7   :  { %v1973_v11 = vpop.permute.xlu1 %1972 }
 0x3d8   :  { %v1976_v49 = vrot.slane %v1973_v11, 4 }
 0x3da   :  { %v1978_v3 = vsel %vm69_vm3, %v1976_v49, %v1973_v11  ;;  %1985 = vst.msk [vmem:[#allocation2 + $0x8] sm:$0xf] %vm80_vm4, %v1976_v49 }
 0x3db   :  { %1984 = vst.msk [vmem:[#allocation2] sm:$0xff] %vm4056_vm5, %v1978_v3  ;;  %v1975_v42 = vpop.permute.xlu1 %1974 }
 0x3dc   :  { %v1977_v43 = vrot.slane %v1975_v42, 4 }
 0x3de   :  { %v1979_v12 = vsel %vm69_vm3, %v1977_v43, %v1975_v42  ;;  %1987 = vst.msk [vmem:[#allocation2 + $0x14] sm:$0xf] %vm80_vm4, %v1977_v43 }
 0x3df   :  { %1986 = vst.msk [vmem:[#allocation2 + $0xc] sm:$0xff] %vm4056_vm5, %v1979_v12 }
 0x3e1   :  { %v4419_v14 = vld [vmem:[#allocation2 + $0x8] sm:$0xf] }
 0x3e2   :  { %v1995_v15 = vmul.f32 %v4419_v14, %v4068_v51  ;;  %v4423_v17 = vld [vmem:[#allocation2] sm:$0xff]  ;;  %v1999_v22 = vmul.f32 %v4419_v14, %v4083_v60  ;;  %v2003_v24 = vmul.f32 %v4419_v14, %v4081_v59  ;;  %v2007_v31 = vmul.f32 %v4419_v14, %v4099_v4 }
 0x3e3   :  { %v1998_v18 = vmul.f32 %v4423_v17, %v4092_v63  ;;  %v2002_v20 = vmul.f32 %v4423_v17, %v4097_v2  ;;  %v2006_v61 = vmul.f32 %v4423_v17, %v4111_v9  ;;  %v2010_v23 = vmul.f32 %v4423_v17, %v4120_v13 }
 0x3e4   :  { %2033 = vrot.lane.b32.xlu1 %v1995_v15, %s3955_s5  ;;  %v2014_v27 = vmul.f32 %v4423_v17, %v4145_v26  ;;  %v2018_v30 = vmul.f32 %v4423_v17, %v4152_v28  ;;  %v2022_v56 = vmul.f32 %v4423_v17, %v4209_v5  ;;  %v2015_v57 = vmul.f32 %v4419_v14, %v4136_v21 }
 0x3e5   :  { %2198 = vrot.lane.b32.xlu0 %v1998_v18, %s3956_s28  ;;  %v4429_v19 = vld [vmem:[#allocation2 + $0x14] sm:$0xf]  ;;  %v2197_v29 = vcombine.high %v1998_v18, %v1998_v18  ;;  %v2288_v37 = vcombine.high %v2002_v20, %v2002_v20  ;;  %v2379_v54 = vcombine.high %v2006_v61, %v2006_v61  ;;  %v2470_v46 = vcombine.high %v2010_v23, %v2010_v23 }
 0x3e6   :  { %v1997_v44 = vmul.f32 %v4429_v19, %v4068_v51  ;;  %v2001_v51 = vmul.f32 %v4429_v19, %v4083_v60  ;;  %v1994_v60 = vmul.f32 %v4423_v17, %v4075_v55  ;;  %v4459_v32 = vld [vmem:[#allocation2 + $0xc] sm:$0xff]  ;;  %v2005_v40 = vmul.f32 %v4429_v19, %v4081_v59 }
 0x3e7   :  { %v1996_v33 = vmul.f32 %v4459_v32, %v4075_v55  ;;  %v2000_v34 = vmul.f32 %v4459_v32, %v4092_v63  ;;  %v2004_v39 = vmul.f32 %v4459_v32, %v4097_v2  ;;  %v2008_v41 = vmul.f32 %v4459_v32, %v4111_v9 }
 0x3e8   :  { %2839 = vrot.lane.b32.xlu1 %v1997_v44, %s3955_s5  ;;  %v2028_v36 = vcombine.high %v1994_v60, %v1994_v60  ;;  %v2012_v59 = vmul.f32 %v4459_v32, %v4120_v13  ;;  %v2009_v9 = vmul.f32 %v4429_v19, %v4099_v4  ;;  %v2561_v16 = vcombine.high %v2014_v27, %v2014_v27 }
 0x3e9   :  { %2289 = vrot.lane.b32.xlu0 %v2002_v20, %s3957_s29  ;;  %v2997_v35 = vcombine.high %v2000_v34, %v2000_v34  ;;  %v2834_v55 = vcombine.high %v1996_v33, %v1996_v33  ;;  %v3085_v63 = vcombine.high %v2004_v39, %v2004_v39  ;;  %v3173_v2 = vcombine.high %v2008_v41, %v2008_v41 }
 0x3ea   :  { %v3261_v47 = vcombine.high %v2012_v59, %v2012_v59  ;;  %v2016_v48 = vmul.f32 %v4459_v32, %v4145_v26  ;;  %v2011_v13 = vmul.f32 %v4419_v14, %v4107_v8  ;;  %v2013_v4 = vmul.f32 %v4429_v19, %v4107_v8 }
 0x3eb   :  { %v2652_v53 = vcombine.high %v2018_v30, %v2018_v30  ;;  %v2020_v45 = vmul.f32 %v4459_v32, %v4152_v28  ;;  %v2743_v8 = vcombine.high %v2022_v56, %v2022_v56  ;;  %v2024_v62 = vmul.f32 %v4459_v32, %v4209_v5 }
 0x3ec   :  { %2202 = vrot.lane.b32.xlu1 %v1999_v22, %s3956_s28  ;;  %v3349_v50 = vcombine.high %v2016_v48, %v2016_v48  ;;  %v2017_v28 = vmul.f32 %v4429_v19, %v4136_v21  ;;  %v2019_v1 = vmul.f32 %v4419_v14, %v4142_v25  ;;  %v2021_v5 = vmul.f32 %v4429_v19, %v4142_v25 }
 0x3ed   :  { %2380 = vrot.lane.b32.xlu0 %v2006_v61, %s3958_s30  ;;  %v3437_v26 = vcombine.high %v2020_v45, %v2020_v45  ;;  %v3525_v0 = vcombine.high %v2024_v62, %v2024_v62  ;;  %v2023_v21 = vmul.f32 %v4419_v14, %v4200_v58  ;;  %v2025_v7 = vmul.f32 %v4429_v19, %v4200_v58 }
 0x3ee   :  { %v1990_v61 = vmul.f32 %v4423_v17, %v4053_v38 }
 0x3f0   :  { %3002 = vrot.lane.b32.xlu1 %v2001_v51, %s3956_s28 }
 0x3f1   :  { %2471 = vrot.lane.b32.xlu0 %v2010_v23, %s3959_s7 }
 0x3f4   :  { %2293 = vrot.lane.b32.xlu1 %v2003_v24, %s3957_s29 }
 0x3f5   :  { %2562 = vrot.lane.b32.xlu0 %v2014_v27, %s3960_s8 }
 0x3f8   :  { %2029 = vrot.lane.b32.xlu1 %v1994_v60, %s3955_s5  ;;  %v38_v60 = vld [vmem:[%s4724_s3 + $0x4] sm:$0xf] }
 0x3f9   :  { %2653 = vrot.lane.b32.xlu0 %v2018_v30, %s3961_s9  ;;  %v2116_v30 = vcombine.high %v1990_v61, %v1990_v61 }
 0x3fc   :  { %2835 = vrot.lane.b32.xlu1 %v1996_v33, %s3955_s5  ;;  %v1991_v33 = vmul.f32 %v4459_v32, %v4053_v38 }
 0x3fd   :  { %2200 = vrot.lane.b32.xlu0 %v2197_v29, %s3956_s28 }
 0x3fe   :  { %v2919_v38 = vcombine.high %v1991_v33, %v1991_v33 }
 0x400   :  { %2998 = vrot.lane.b32.xlu1 %v2000_v34, %s3956_s28 }
 0x401   :  { %3000 = vrot.lane.b32.xlu0 %v2997_v35, %s3956_s28 }
 0x404   :  { %2031 = vrot.lane.b32.xlu1 %v2028_v36, %s3955_s5 }
 0x405   :  { %2291 = vrot.lane.b32.xlu0 %v2288_v37, %s3957_s29 }
 0x408   :  { %2837 = vrot.lane.b32.xlu1 %v2834_v55, %s3955_s5  ;;  %v37_v55 = vld [vmem:[%s4724_s3] sm:$0xf] }
 0x409   :  { %3088 = vrot.lane.b32.xlu0 %v3085_v63, %s3957_s29 }
 0x40c   :  { %3090 = vrot.lane.b32.xlu1 %v2005_v40, %s3957_s29 }
 0x40d   :  { %2382 = vrot.lane.b32.xlu0 %v2379_v54, %s3958_s30 }
 0x410   :  { %3086 = vrot.lane.b32.xlu1 %v2004_v39, %s3957_s29 }
 0x411   :  { %3176 = vrot.lane.b32.xlu0 %v3173_v2, %s3958_s30 }
 0x414   :  { %2384 = vrot.lane.b32.xlu1 %v2007_v31, %s3958_s30 }
 0x415   :  { %2473 = vrot.lane.b32.xlu0 %v2470_v46, %s3959_s7 }
 0x418   :  { %3178 = vrot.lane.b32.xlu1 %v2009_v9, %s3958_s30  ;;  %v39_v9 = vld [vmem:[%s4724_s3 + $0x8] sm:$0xf] }
 0x419   :  { %3264 = vrot.lane.b32.xlu0 %v3261_v47, %s3959_s7 }
 0x41c   :  { %3174 = vrot.lane.b32.xlu1 %v2008_v41, %s3958_s30 }
 0x41d   :  { %2564 = vrot.lane.b32.xlu0 %v2561_v16, %s3960_s8 }
 0x420   :  { %2475 = vrot.lane.b32.xlu1 %v2011_v13, %s3959_s7 }
 0x421   :  { %3352 = vrot.lane.b32.xlu0 %v3349_v50, %s3960_s8 }
 0x424   :  { %3266 = vrot.lane.b32.xlu1 %v2013_v4, %s3959_s7 }
 0x425   :  { %2655 = vrot.lane.b32.xlu0 %v2652_v53, %s3961_s9 }
 0x428   :  { %3262 = vrot.lane.b32.xlu1 %v2012_v59, %s3959_s7 }
 0x429   :  { %3440 = vrot.lane.b32.xlu0 %v3437_v26, %s3961_s9 }
 0x42c   :  { %2566 = vrot.lane.b32.xlu1 %v2015_v57, %s3960_s8 }
 0x42d   :  { %2746 = vrot.lane.b32.xlu0 %v2743_v8, %s3963_s10 }
 0x430   :  { %3354 = vrot.lane.b32.xlu1 %v2017_v28, %s3960_s8 }
 0x431   :  { %3528 = vrot.lane.b32.xlu0 %v3525_v0, %s3963_s10 }
 0x434   :  { %3350 = vrot.lane.b32.xlu1 %v2016_v48, %s3960_s8 }
 0x435   :  { %2744 = vrot.lane.b32.xlu0 %v2022_v56, %s3963_s10 }
 0x438   :  { %2657 = vrot.lane.b32.xlu1 %v2019_v1, %s3961_s9 }
 0x439   :  { %3612 = vperm.xlu0 %3912, %v4232_v52  }
 0x43c   :  { %3442 = vrot.lane.b32.xlu1 %v2021_v5, %s3961_s9  ;;  %v41_v5 = vld [vmem:[%s4724_s3 + $0x10] sm:$0xf] }
 0x440   :  { %3438 = vrot.lane.b32.xlu1 %v2020_v45, %s3961_s9  ;;  %v40_v45 = vld [vmem:[%s4724_s3 + $0xc] sm:$0xf] }
 0x444   :  { %2748 = vrot.lane.b32.xlu1 %v2023_v21, %s3963_s10 }
 0x448   :  { %3530 = vrot.lane.b32.xlu1 %v2025_v7, %s3963_s10 }
 0x44c   :  { %3526 = vrot.lane.b32.xlu1 %v2024_v62, %s3963_s10 }
 0x456   :  { %v2034_v25 = vpop.permute.xlu1 %2033 }
 0x457   :  { %v2199_v11 = vpop.permute.xlu0 %2198 }
 0x45a   :  { %v2840_v49 = vpop.permute.xlu1 %2839 }
 0x45b   :  { %v4540_v3 = vpop.permute.xlu0 %2289 }
 0x45e   :  { %v2203_v42 = vpop.permute.xlu1 %2202 }
 0x45f   :  { %v4542_v43 = vpop.permute.xlu0 %2380 }
 0x462   :  { %v3003_v12 = vpop.permute.xlu1 %3002 }
 0x463   :  { %v4544_v14 = vpop.permute.xlu0 %2471 }
 0x466   :  { %v2294_v52 = vpop.permute.xlu1 %2293 }
 0x467   :  { %v4546_v15 = vpop.permute.xlu0 %2562 }
 0x46a   :  { %v2030_v18 = vpop.permute.xlu1 %2029 }
 0x46b   :  { %v4548_v58 = vpop.permute.xlu0 %2653 }
 0x46e   :  { %v2836_v19 = vpop.permute.xlu1 %2835 }
 0x46f   :  { %v2201_v44 = vpop.permute.xlu0 %2200 }
 0x470   :  { %v2205_v29 = vsel %vm449_vm0, %v2201_v44, %v2203_v42  ;;  %v2204_v63 = vsel %vm449_vm0, %v2199_v11, %v2201_v44 }
 0x472   :  { %v2999_v20 = vpop.permute.xlu1 %2998 }
 0x473   :  { %v3001_v22 = vpop.permute.xlu0 %3000 }
 0x474   :  { %v3005_v37 = vsel %vm449_vm0, %v3001_v22, %v3003_v12  ;;  %v3004_v2 = vsel %vm449_vm0, %v2999_v20, %v3001_v22 }
 0x476   :  { %v2032_v51 = vpop.permute.xlu1 %2031 }
 0x477   :  { %v2035_v23 = vsel %vm277_vm13, %v2030_v18, %v2032_v51  ;;  %v2036_v24 = vsel %vm277_vm13, %v2032_v51, %v2034_v25  ;;  %v2292_v27 = vpop.permute.xlu0 %2291 }
 0x478   :  { %3764 = vmatprep.subr.msk.mxu0 %vm284_vm14, %v2036_v24  ;;  %v2296_v54 = vsel %vm541_vm1, %v2292_v27, %v2294_v52  ;;  %v2295_v47 = vsel %vm541_vm1, %v4540_v3, %v2292_v27  ;;  %v42_v3 = vld [vmem:[%s4724_s3 + $0x14] sm:$0xf]  ;;  %v44_v24 = vld [vmem:[%s4724_s3 + $0x1c] sm:$0xf] }
 0x479   :  { %3765 = vmatpush1.msk.msra.mxu0 %vm284_vm14, %v2035_v23 }
 0x47a   :  { %3766 = vmatmul.mubr.msk.f32.vlgmr.msra.gmra.mrb[2].mxu0 %vm280_vm15, %v38_v60  ;;  %3767 = vmatprep.subr.msk.mxu0 %vm284_vm14, %v2116_v30  ;;  %v2838_v17 = vpop.permute.xlu1 %2837 }
 0x47b   :  { %v2841_v34 = vsel %vm277_vm13, %v2836_v19, %v2838_v17  ;;  %v2842_v35 = vsel %vm277_vm13, %v2838_v17, %v2840_v49  ;;  %v3089_v36 = vpop.permute.xlu0 %3088  ;;  %3768 = vmatpush1.msk.msra.mxu0 %vm284_vm14, %v1990_v61  ;;  %2188 = vmatprep.mubr.f32.mxu0 %v3947_v10  ;;  %v45_v17 = vld [vmem:[%s4724_s3 + $0x20] sm:$0xf] }
 0x47c   :  { %3770 = vmatprep.subr.msk.mxu0 %vm284_vm14, %v2205_v29  ;;  %3791 = vmatprep.subr.msk.mxu1 %vm284_vm14, %v2842_v35 }
 0x47d   :  { %3792 = vmatpush1.msk.msra.mxu1 %vm284_vm14, %v2841_v34 }
 0x47e   :  { %3793 = vmatmul.mubr.msk.f32.vlgmr.msra.gmra.mrb[2].mxu1 %vm280_vm15, %v38_v60  ;;  %3794 = vmatprep.subr.msk.mxu1 %vm284_vm14, %v2919_v38  ;;  %v3091_v32 = vpop.permute.xlu1 %3090 }
 0x47f   :  { %v2383_v39 = vpop.permute.xlu0 %2382  ;;  %3795 = vmatpush1.msk.msra.mxu1 %vm284_vm14, %v1991_v33  ;;  %2988 = vmatprep.mubr.f32.mxu1 %v3947_v10  ;;  %v3093_v46 = vsel %vm541_vm1, %v3089_v36, %v3091_v32 }
 0x480   :  { %3797 = vmatprep.subr.msk.mxu1 %vm284_vm14, %v3005_v37  ;;  %v2386_v56 = vsel %vm633_vm2, %v4542_v43, %v2383_v39 }
 0x482   :  { %3769 = vmatmul.mubr.msk.f32.vlgmr.msra.gmra.mrb[2].mxu0 %vm280_vm15, %v37_v55  ;;  %v3087_v40 = vpop.permute.xlu1 %3086 }
 0x483   :  { %3771 = vmatpush1.msk.msra.mxu0 %vm284_vm14, %v2204_v63  ;;  %v3177_v41 = vpop.permute.xlu0 %3176  ;;  %2277 = vmatprep.mubr.f32.mxu0 %v3947_v10  ;;  %v3092_v50 = vsel %vm541_vm1, %v3087_v40, %v3089_v36 }
 0x484   :  { %3773 = vmatprep.subr.msk.mxu0 %vm284_vm14, %v2296_v54 }
 0x486   :  { %3796 = vmatmul.mubr.msk.f32.vlgmr.msra.gmra.mrb[2].mxu1 %vm280_vm15, %v37_v55  ;;  %v2385_v31 = vpop.permute.xlu1 %2384 }
 0x487   :  { %3798 = vmatpush1.msk.msra.mxu1 %vm284_vm14, %v3004_v2  ;;  %v2474_v59 = vpop.permute.xlu0 %2473  ;;  %3074 = vmatprep.mubr.f32.mxu1 %v3947_v10  ;;  %v2387_v48 = vsel %vm633_vm2, %v2383_v39, %v2385_v31 }
 0x488   :  { %3800 = vmatprep.subr.msk.mxu1 %vm284_vm14, %v3093_v46  ;;  %v2477_v21 = vsel %vm725_vm6, %v4544_v14, %v2474_v59 }
 0x48a   :  { %3772 = vmatmul.mubr.msk.f32.vlgmr.msra.gmra.mrb[2].mxu0 %vm280_vm15, %v39_v9  ;;  %v3179_v16 = vpop.permute.xlu1 %3178 }
 0x48b   :  { %3774 = vmatpush1.msk.msra.mxu0 %vm284_vm14, %v2295_v47  ;;  %v3265_v13 = vpop.permute.xlu0 %3264  ;;  %2368 = vmatprep.mubr.f32.mxu0 %v3947_v10  ;;  %v3181_v53 = vsel %vm633_vm2, %v3177_v41, %v3179_v16 }
 0x48c   :  { %3776 = vmatprep.subr.msk.mxu0 %vm284_vm14, %v2387_v48 }
 0x48e   :  { %3799 = vmatmul.mubr.msk.f32.vlgmr.msra.gmra.mrb[2].mxu1 %vm280_vm15, %v39_v9  ;;  %v3175_v4 = vpop.permute.xlu1 %3174 }
 0x48f   :  { %3801 = vmatpush1.msk.msra.mxu1 %vm284_vm14, %v3092_v50  ;;  %3162 = vmatprep.mubr.f32.mxu1 %v3947_v10  ;;  %v2565_v26 = vpop.permute.xlu0 %2564  ;;  %v3180_v62 = vsel %vm633_vm2, %v3175_v4, %v3177_v41 }
 0x490   :  { %3803 = vmatprep.subr.msk.mxu1 %vm284_vm14, %v3181_v53  ;;  %v2568_v42 = vsel %vm817_vm7, %v4546_v15, %v2565_v26  ;;  %v43_v15 = vld [vmem:[%s4724_s3 + $0x18] sm:$0xf] }
 0x492   :  { %3775 = vmatmul.mubr.msk.f32.vlgmr.msra.gmra.mrb[2].mxu0 %vm280_vm15, %v40_v45  ;;  %v2476_v57 = vpop.permute.xlu1 %2475 }
 0x493   :  { %3777 = vmatpush1.msk.msra.mxu0 %vm284_vm14, %v2386_v56  ;;  %v2478_v8 = vsel %vm725_vm6, %v2474_v59, %v2476_v57  ;;  %2459 = vmatprep.mubr.f32.mxu0 %v3947_v10  ;;  %v3353_v0 = vpop.permute.xlu0 %3352 }
 0x494   :  { %3779 = vmatprep.subr.msk.mxu0 %vm284_vm14, %v2478_v8  ;;  %v3968_v8 = vmov 4  }
 0x495   :  { %3913 = vset.pattern.permute.xlu1 %v3968_v8 }
 0x496   :  { %3802 = vmatmul.mubr.msk.f32.vlgmr.msra.gmra.mrb[2].mxu1 %vm280_vm15, %v40_v45  ;;  %v3267_v28 = vpop.permute.xlu1 %3266 }
 0x497   :  { %3804 = vmatpush1.msk.msra.mxu1 %vm284_vm14, %v3180_v62  ;;  %v3269_v1 = vsel %vm725_vm6, %v3265_v13, %v3267_v28  ;;  %3250 = vmatprep.mubr.f32.mxu1 %v3947_v10  ;;  %v2656_v7 = vpop.permute.xlu0 %2655  ;;  %v3969_v62 = vmov 5   ;;  %v3919_v28 = vld [vmem:[%s4725_s4] sm:$0xf]  ;;  %s3970_s4 = smov [#allocation3]  }
 0x498   :  { %3806 = vmatprep.subr.msk.mxu1 %vm284_vm14, %v3269_v1  ;;  %v2659_v22 = vsel %vm909_vm8, %v4548_v58, %v2656_v7  ;;  %3914 = vset.pattern.permute.xlu0 %v3969_v62  ;;  %s3699_s11 = sshll.u32 %s3970_s4, 4  ;;  %s3700_s11 = int_to_ptr.vmem [resolvable:$true] %s3699_s11 }
 0x499   :  { %s3922_s15 = scalar_lea.vmem %s3700_s11, 256  ;;  %p3927_p1 = scmp.lt.s32.totalorder %s3700_s11, %s3700_s11 }
 0x49a   :  { %3778 = vmatmul.mubr.msk.f32.vlgmr.msra.gmra.mrb[2].mxu0 %vm280_vm15, %v41_v5  ;;  %v3263_v6 = vpop.permute.xlu1 %3262  ;;  %p3923_p0 = scmp.ne.s32.totalorder %s3700_s11, %s3922_s15  ;;  %p3928_p2 = scmp.lt.s32.totalorder %s3922_s15, %s3922_s15 }
 0x49b   :  { %3780 = vmatpush1.msk.msra.mxu0 %vm284_vm14, %v2477_v21  ;;  %2550 = vmatprep.mubr.f32.mxu0 %v3947_v10  ;;  %v3268_v25 = vsel %vm725_vm6, %v3263_v6, %v3265_v13  ;;  %v3441_v12 = vpop.permute.xlu0 %3440 }
 0x49c   :  { %p3929_p3 = por %p3928_p2, %p3927_p1 }
 0x49e   :  { %3805 = vmatmul.mubr.msk.f32.vlgmr.msra.gmra.mrb[2].mxu1 %vm280_vm15, %v41_v5  ;;  %v2567_v11 = vpop.permute.xlu1 %2566  ;;  %p3930_p4 = pnand %p3929_p3, %p3923_p0 }
 0x49f   :  { %3807 = vmatpush1.msk.msra.mxu1 %vm284_vm14, %v3268_v25  ;;  %v2569_v49 = vsel %vm817_vm7, %v2565_v26, %v2567_v11  ;;  %3338 = vmatprep.mubr.f32.mxu1 %v3947_v10  ;;  %v2747_v19 = vpop.permute.xlu0 %2746 }
 0x4a0   :  { %3782 = vmatprep.subr.msk.mxu0 %vm284_vm14, %v2569_v49 }
 0x4a2   :  { %3781 = vmatmul.mubr.msk.f32.vlgmr.msra.gmra.mrb[2].mxu0 %vm280_vm15, %v42_v3  ;;  %v3355_v43 = vpop.permute.xlu1 %3354 }
 0x4a3   :  { %3783 = vmatpush1.msk.msra.mxu0 %vm284_vm14, %v2568_v42  ;;  %v3357_v14 = vsel %vm817_vm7, %v3353_v0, %v3355_v43  ;;  %2641 = vmatprep.mubr.f32.mxu0 %v3947_v10  ;;  %v3529_v51 = vpop.permute.xlu0 %3528 }
 0x4a4   :  { %3809 = vmatprep.subr.msk.mxu1 %vm284_vm14, %v3357_v14 }
 0x4a6   :  { %v3351_v52 = vpop.permute.xlu1 %3350  ;;  %3808 = vmatmul.mubr.msk.f32.vlgmr.msra.gmra.mrb[2].mxu1 %vm280_vm15, %v42_v3 }
 0x4a7   :  { %v3356_v18 = vsel %vm817_vm7, %v3351_v52, %v3353_v0  ;;  %3426 = vmatprep.mubr.f32.mxu1 %v3947_v10  ;;  %v2745_v60 = vpop.permute.xlu0 %2744 }
 0x4a8   :  { %3810 = vmatpush1.msk.msra.mxu1 %vm284_vm14, %v3356_v18  ;;  %v2750_v29 = vsel %vm1001_vm9, %v2745_v60, %v2747_v19 }
 0x4aa   :  { %3784 = vmatmul.mubr.msk.f32.vlgmr.msra.gmra.mrb[2].mxu0 %vm280_vm15, %v43_v15  ;;  %v2658_v44 = vpop.permute.xlu1 %2657 }
 0x4ab   :  { %v2660_v20 = vsel %vm909_vm8, %v2656_v7, %v2658_v44  ;;  %2732 = vmatprep.mubr.f32.mxu0 %v3947_v10 }
 0x4ac   :  { %3785 = vmatprep.subr.msk.mxu0 %vm284_vm14, %v2660_v20 }
 0x4ad   :  { %3786 = vmatpush1.msk.msra.mxu0 %vm284_vm14, %v2659_v22 }
 0x4ae   :  { %v3443_v61 = vpop.permute.xlu1 %3442  ;;  %3811 = vmatmul.mubr.msk.f32.vlgmr.msra.gmra.mrb[2].mxu1 %vm280_vm15, %v43_v15 }
 0x4af   :  { %v3445_v23 = vsel %vm909_vm8, %v3441_v12, %v3443_v61  ;;  %3514 = vmatprep.mubr.f32.mxu1 %v3947_v10 }
 0x4b0   :  { %3812 = vmatprep.subr.msk.mxu1 %vm284_vm14, %v3445_v23 }
 0x4b2   :  { %3787 = vmatmul.mubr.msk.f32.vlgmr.msra.gmra.mrb[2].mxu0 %vm280_vm15, %v44_v24  ;;  %v3439_v58 = vpop.permute.xlu1 %3438 }
 0x4b3   :  { %v3444_v27 = vsel %vm909_vm8, %v3439_v58, %v3441_v12  ;;  %2823 = vmatprep.mubr.f32.mxu0 %v3947_v10 }
 0x4b4   :  { %3813 = vmatpush1.msk.msra.mxu1 %vm284_vm14, %v3444_v27 }
 0x4b6   :  { %v2749_v30 = vpop.permute.xlu1 %2748  ;;  %3814 = vmatmul.mubr.msk.f32.vlgmr.msra.gmra.mrb[2].mxu1 %vm280_vm15, %v44_v24 }
 0x4b7   :  { %v2751_v33 = vsel %vm1001_vm9, %v2747_v19, %v2749_v30  ;;  %3602 = vmatprep.mubr.f32.mxu1 %v3947_v10 }
 0x4b8   :  { %3788 = vmatprep.subr.msk.mxu0 %vm284_vm14, %v2751_v33  ;;  %v3613_v10 = vpop.permute.xlu0 %3612 }
 0x4b9   :  { %3789 = vmatpush1.msk.msra.mxu0 %vm284_vm14, %v2750_v29 }
 0x4ba   :  { %3790 = vmatmul.mubr.msk.f32.vlgmr.msra.gmra.mrb[2].mxu0 %vm280_vm15, %v45_v17  ;;  %v3531_v34 = vpop.permute.xlu1 %3530 }
 0x4bb   :  { %v3533_v35 = vsel %vm1001_vm9, %v3529_v51, %v3531_v34 }
 0x4bc   :  { %3815 = vmatprep.subr.msk.mxu1 %vm284_vm14, %v3533_v35 }
 0x4be   :  { %v3527_v36 = vpop.permute.xlu1 %3526 }
 0x4bf   :  { %v3532_v38 = vsel %vm1001_vm9, %v3527_v36, %v3529_v51 }
 0x4c0   :  { %3816 = vmatpush1.msk.msra.mxu1 %vm284_vm14, %v3532_v38 }
 0x4c1   :  { %3817 = vmatmul.mubr.msk.f32.vlgmr.msra.gmra.mrb[2].mxu1 %vm280_vm15, %v45_v17 }
 0x58d   :  { %v2825_v32 = vpop.f32.mrb[2].mxu0 }
 0x58e   :  { %v3615_v37 = vadd.f32 %v3613_v10, %v2825_v32  ;;  %v2827_v39 = vpop.f32.mrb[3].mxu0 }
 0x58f   :  { %v3616_v55 = vadd.f32 %v3613_v10, %v2827_v39 }
 0x590   :  { %v3632_v63 = vmul.f32 %v3615_v37, %v3615_v37  ;;  %v3619_v40 = vsel %vm284_vm14, %v3615_v37, 0.0 }
 0x591   :  { %v3633_v54 = vmul.f32 %v3616_v55, %v3616_v55  ;;  %v3620_v41 = vsel %vm284_vm14, %v3616_v55, 0.0 }
 0x592   :  { %v3621_v2 = vadd.f32 %v3620_v41, %v3619_v40  ;;  %v3636_v31 = vsel %vm284_vm14, %v3632_v63, 0.0 }
 0x593   :  { %v3637_v46 = vsel %vm284_vm14, %v3633_v54, 0.0 }
 0x594   :  { %3622 = vadd.xlane.f32.xlu1 %v3621_v2  ;;  %v3604_v59 = vpop.f32.mrb[2].mxu1  ;;  %v3638_v48 = vadd.f32 %v3637_v46, %v3636_v31 }
 0x595   :  { %v3617_v9 = vadd.f32 %v3613_v10, %v3604_v59  ;;  %v3606_v47 = vpop.f32.mrb[3].mxu1 }
 0x596   :  { %v3618_v16 = vadd.f32 %v3613_v10, %v3606_v47 }
 0x597   :  { %v3634_v13 = vmul.f32 %v3617_v9, %v3617_v9  ;;  %v3624_v50 = vsel %vm284_vm14, %v3617_v9, 0.0 }
 0x598   :  { %v3635_v4 = vmul.f32 %v3618_v16, %v3618_v16  ;;  %3639 = vadd.xlane.f32.xlu1 %v3638_v48  ;;  %v3625_v53 = vsel %vm284_vm14, %v3618_v16, 0.0 }
 0x599   :  { %v3626_v45 = vadd.f32 %v3625_v53, %v3624_v50  ;;  %v3641_v26 = vsel %vm284_vm14, %v3634_v13, 0.0 }
 0x59a   :  { %v3642_v56 = vsel %vm284_vm14, %v3635_v4, 0.0 }
 0x59b   :  { %3627 = vadd.xlane.f32.xlu0 %v3626_v45  ;;  %v3643_v57 = vadd.f32 %v3642_v56, %v3641_v26 }
 0x59f   :  { %3644 = vadd.xlane.f32.xlu0 %v3643_v57 }
 0x5b5   :  { %3671 = vperm.xlu0 %3914, %v3919_v28  }
 0x621   :  { %v3623_v0 = vpop.xlane.xlu1 %3622 }
 0x622   :  { %v3629_v5 = vsel %vm284_vm14, %v3623_v0, 0.0 }
 0x625   :  { %v3640_v6 = vpop.xlane.xlu1 %3639 }
 0x626   :  { %v3646_v49 = vsel %vm284_vm14, %v3640_v6, 0.0 }
 0x628   :  { %v3628_v1 = vpop.xlane.xlu0 %3627 }
 0x629   :  { %v3630_v21 = vsel %vm284_vm14, %v3628_v1, 0.0 }
 0x62a   :  { %v3631_v7 = vadd.f32 %v3630_v21, %v3629_v5 }
 0x62c   :  { %v3649_v25 = vmul.f32 0.001953125, %v3631_v7  ;;  %v3645_v11 = vpop.xlane.xlu0 %3644 }
 0x62d   :  { %v3647_v3 = vsel %vm284_vm14, %v3645_v11, 0.0 }
 0x62e   :  { %v3648_v42 = vadd.f32 %v3647_v3, %v3646_v49  ;;  %v3651_v12 = vmul.f32 %v3649_v25, %v3649_v25  ;;  %v3654_v44 = vsub.f32 %v3615_v37, %v3649_v25  ;;  %v3655_v20 = vsub.f32 %v3616_v55, %v3649_v25  ;;  %v3920_v37 = vld [vmem:[%s4721_s0] sm:$0xff]  ;;  %v3921_v55 = vld [vmem:[%s4721_s0 + $0x8] sm:$0xff] }
 0x62f   :  { %v3656_v22 = vsub.f32 %v3617_v9, %v3649_v25  ;;  %v3657_v61 = vsub.f32 %v3618_v16, %v3649_v25 }
 0x630   :  { %v3650_v43 = vmul.f32 0.001953125, %v3648_v42 }
 0x632   :  { %v3652_v14 = vsub.f32 %v3650_v43, %v3651_v12 }
 0x634   :  { %v3653_v52 = vmax.f32 %v3652_v14, 0.0  ;;  %v3672_v23 = vpop.permute.xlu0 %3671 }
 0x636   :  { %v3658_v18 = vadd.f32 1e-05, %v3653_v52 }
 0x638   :  { %3917 = vrsqrt.f32 %v3658_v18 }
 0x642   :  { %v3918_v15 = vpop.eup %3917 }
 0x643   :  { %v3660_v19 = vmul.f32 %v3919_v28, %v3918_v15 }
 0x645   :  { %3663 = vperm.xlu1 %3913, %v3660_v19  }
 0x6c4   :  { %v3664_v51 = vpop.permute.xlu1 %3663 }
 0x6c5   :  { %v3666_v24 = vmul.f32 %v3664_v51, %v3654_v44  ;;  %v3667_v58 = vmul.f32 %v3664_v51, %v3655_v20  ;;  %v3668_v27 = vmul.f32 %v3664_v51, %v3656_v22  ;;  %v3669_v60 = vmul.f32 %v3664_v51, %v3657_v61 }
 0x6c7   :  { %v3674_v30 = vadd.f32 %v3672_v23, %v3666_v24  ;;  %v3675_v33 = vadd.f32 %v3672_v23, %v3667_v58  ;;  %v3676_v17 = vadd.f32 %v3672_v23, %v3668_v27  ;;  %v3677_v29 = vadd.f32 %v3672_v23, %v3669_v60 }
 0x6c9   :  { %v3678_v34 = vmax.f32 %v3674_v30, 0.0  ;;  %v3679_v35 = vmax.f32 %v3675_v33, 0.0  ;;  %v3680_v36 = vmax.f32 %v3676_v17, 0.0  ;;  %v3681_v38 = vmax.f32 %v3677_v29, 0.0 }
 0x6cb   :  { %v3686_v10 = vcombine.low %v3678_v34, %v3679_v35  ;;  %v3687_v32 = vcombine.low %v3680_v36, %v3681_v38 }
 0x6cd   :  { %v3690_v39 = vadd.f32 %v3920_v37, %v3686_v10  ;;  %v3691_v63 = vadd.f32 %v3921_v55, %v3687_v32 }
 0x6cf   :  { %3692 = vst [vmem:[#allocation3] sm:$0xff] %v3690_v39  ;;  %3693 = vst [vmem:[#allocation3 + $0x8] sm:$0xff] %v3691_v63 }
 0x6d0   :  { %3933 = shalt.err (!%p3930_p4)
}
 0x6d1   :  { %s3934_s1 = scalar_lea.hbm %s4727_s6, 256 }
 0x6d2   :  { %p3935_p5 = scmp.ne.s32.totalorder %s4727_s6, %s3934_s1  ;;  %p3938_p6 = scmp.lt.u32.totalorder %s3934_s1, %s4727_s6 }
 0x6d4   :  { %p3940_p7 = pnand %p3938_p6, %p3935_p5 }
 0x6d6   :  { %3943 = shalt.err (!%p3940_p7)
}
 0x6d7   :  { %s3971_s29 = smov 128   ;;  %s3972_s30 = smov 8  }
 0x6d8   :  { %3705 = dma.vmem_to_hbm [thread:$0]  %s3700_s11, 256, %s4727_s6, [#allocation4], %s3971_s29, %s3971_s29, %s3972_s30  }
 0x6d9   :  { %3944 = dma.done.wait [#allocation4], 256  }
 0x6da   :  { %3945 = vsyncadd [#allocation4], 4294967040 }
 0x6db   :  { %3709 = vsyncpa [#allocation4], 1 }

</bundles_post_ra>
